<compile_context>
chip_gen: v5e
topology: v5e:2x2
jax: 0.10.0
libtpu: 0.0.40
codegen_flags: <defaults>
</compile_context>

<pallas_src>
import jax
import jax.numpy as jnp
from jax import lax
from jax.experimental import pallas as pl
from jax.experimental.pallas import tpu as pltpu

C_PAD = 128  # lane-dense classifier output width (sliced back to n_classes in wrapper)


def classifier_kernel(adj_ref, deg_ref, w1_ref, b1_ref, w2_ref, b2_ref,
                      wc_ref, bc_ref, out_ref):
    # One batch of B graphs per grid step (block-diagonal adjacency => independent).
    adj = adj_ref[...]                                   # (B, N, N) bf16, exact 0/1
    deg = deg_ref[...]                                   # (B, N, 1) f32 in-degrees = h0

    # In-kernel symmetric normalization vector (DGL clamps degree >= 1).  EUP rsqrt.
    dinv = lax.rsqrt(jnp.maximum(deg, 1.0))              # (B, N, 1) f32

    # GraphConv 1: in_dim == 1 so h0 @ W1 is an outer product (no degenerate matmul).
    x1 = (dinv * (deg * w1_ref[...])).astype(jnp.bfloat16)          # (B, N, H)
    h1 = dinv * jnp.einsum('bij,bjh->bih', adj, x1,
                           preferred_element_type=jnp.float32)
    h1 = jnp.maximum(h1 + b1_ref[...], 0.0)              # F.relu, f32

    # GraphConv 2: flatten (B, N, H) -> (B*N, H) so the W2 matmul fills MXU rows.
    b, n, h = h1.shape
    xw2 = jnp.dot(h1.reshape(b * n, h).astype(jnp.bfloat16), w2_ref[...],
                  preferred_element_type=jnp.float32).reshape(b, n, h)
    x2 = (dinv * xw2).astype(jnp.bfloat16)
    h2 = dinv * jnp.einsum('bij,bjh->bih', adj, x2,
                           preferred_element_type=jnp.float32)
    h2 = jnp.maximum(h2 + b2_ref[...], 0.0)              # F.relu, f32

    # dgl.mean_nodes: mean over the node axis (VPU/XLU, no MXU pass).
    # TODO(synk): variable-sized graphs would need a per-graph node count + mask before
    #             the mean; this assumes exactly N real nodes per graph.
    hg = jnp.mean(h2, axis=1)                            # (B, H)

    # self.classify: one (B, H) @ (H, 128) f32 matmul per step, lane-dense padded output.
    out_ref[0] = (jnp.dot(hg, wc_ref[...], preferred_element_type=jnp.float32)
                  + bc_ref[...])


def classifier_forward(adj, deg, w1, b1, w2, b2, wc, bc, *, graphs_per_step=None):
    """adj: (G, N, N) raw 0/1 per-graph adjacency (any float dtype),
       deg: (G, N, 1) in-degrees (f32, also the input features), rest = module params."""
    G, N, _ = adj.shape
    H = w1.shape[1]
    C = wc.shape[1]

    # Graphs per grid step: amortize per-step overhead, keep grid even (>=2) for v7x.
    if graphs_per_step is None:
        graphs_per_step = max(1, G // 2)
    B = graphs_per_step
    assert G % B == 0, "demo assumes G divisible by graphs_per_step (pad batch otherwise)"
    n_steps = G // B

    # bf16 for the O(N^2) operand (exact: entries are 0/1) and for W2; accumulation f32.
    adj_bf16 = adj.astype(jnp.bfloat16)
    w2_bf16 = w2.astype(jnp.bfloat16)

    # Lane-dense padded classifier weights/bias (zero padding; sliced off after).
    wc_pad = jnp.zeros((H, C_PAD), jnp.float32).at[:, :C].set(wc)
    bc_pad = jnp.zeros((1, C_PAD), jnp.float32).at[:, :C].set(bc)

    grid_spec = pltpu.PrefetchScalarGridSpec(
        num_scalar_prefetch=0,
        grid=(n_steps,),
        in_specs=[
            pl.BlockSpec((B, N, N), lambda i: (i, 0, 0)),   # adj batch (bf16 0/1)
            pl.BlockSpec((B, N, 1), lambda i: (i, 0, 0)),   # in-degrees / features
            pl.BlockSpec((1, H), lambda i: (0, 0)),         # W1
            pl.BlockSpec((1, H), lambda i: (0, 0)),         # b1
            pl.BlockSpec((H, H), lambda i: (0, 0)),         # W2 (bf16)
            pl.BlockSpec((1, H), lambda i: (0, 0)),         # b2
            pl.BlockSpec((H, C_PAD), lambda i: (0, 0)),     # Wc (padded)
            pl.BlockSpec((1, C_PAD), lambda i: (0, 0)),     # bc (padded)
        ],
        out_specs=pl.BlockSpec((1, B, C_PAD), lambda i: (i, 0, 0)),
    )

    cost = pl.CostEstimate(
        flops=int(G * (2 * 2 * N * N * H            # two adjacency propagations
                       + 2 * N * H * H              # h1 @ W2
                       + 2 * H * C_PAD)),           # classifier
        transcendentals=int(G * N),                 # rsqrt per node
        bytes_accessed=int(adj_bf16.size * 2 + deg.size * 4
                           + (w1.size + b1.size + b2.size) * 4 + w2_bf16.size * 2
                           + (wc_pad.size + bc_pad.size) * 4 + G * C_PAD * 4),
    )

    # Keep 2-buffered adj blocks comfortably inside scoped VMEM on every generation
    # (v5e default scoped limit is only 16 MiB; v7x physical VMEM is 64 MiB).
    per_step_bytes = B * N * N * 2 + B * N * 4
    vmem_limit = int(min(48 << 20, max(16 << 20, 6 * per_step_bytes)))

    out_pad = pl.pallas_call(
        classifier_kernel,
        out_shape=jax.ShapeDtypeStruct((n_steps, B, C_PAD), jnp.float32),
        grid_spec=grid_spec,
        compiler_params=pltpu.CompilerParams(
            dimension_semantics=("parallel",),       # v7x: split graph-batches across TCs
            vmem_limit_bytes=vmem_limit),
        cost_estimate=cost,
    )(adj_bf16, deg, w1, b1, w2_bf16, b2, wc_pad, bc_pad)

    return out_pad.reshape(G, C_PAD)[:, :C]


if __name__ == "__main__":
    key = jax.random.PRNGKey(0)

    # Small synthetic batch: G graphs of N nodes each (stacked per-graph adjacency).
    G = 8
    N = 64
    in_dim, hidden, n_classes = 1, 32, 5

    k_adj, k_w1, k_w2, k_wc, k_bc = jax.random.split(key, 5)

    # Random undirected graphs (symmetric 0/1, no self loops).
    a = jax.random.bernoulli(k_adj, 0.3, (G, N, N)).astype(jnp.float32)
    a = jnp.triu(a, 1)
    a = a + jnp.swapaxes(a, 1, 2)

    deg = jnp.sum(a, axis=2, keepdims=True)              # in-degrees, (G, N, 1)

    # Deterministic parameter init (Glorot-uniform weights, zero / small biases).
    def glorot(k, shape):
        fan_in, fan_out = shape
        lim = (6.0 / (fan_in + fan_out)) ** 0.5
        return jax.random.uniform(k, shape, jnp.float32, -lim, lim)

    w1 = glorot(k_w1, (in_dim, hidden))
    b1 = jnp.zeros((1, hidden), jnp.float32)
    w2 = glorot(k_w2, (hidden, hidden))
    b2 = jnp.zeros((1, hidden), jnp.float32)
    wc = glorot(k_wc, (hidden, n_classes))
    bc = jax.random.uniform(k_bc, (1, n_classes), jnp.float32, -0.1, 0.1)

    logits = classifier_forward(a, deg, w1, b1, w2, b2, wc, bc, graphs_per_step=4)
    jax.block_until_ready(logits)

    # Pure-JAX f32 reference (features/W2 run in bf16 on the MXU -> modest tolerance).
    dinv = 1.0 / jnp.sqrt(jnp.maximum(deg, 1.0))          # DGL clamps degree >= 1
    adj_norm = dinv * a * jnp.swapaxes(dinv, 1, 2)        # D^{-1/2} A D^{-1/2} per graph
    h1 = jax.nn.relu(jnp.einsum('gij,gjh->gih', adj_norm, deg * w1[None]) + b1)
    h2 = jax.nn.relu(jnp.einsum('gij,gjh->gih', adj_norm,
                                jnp.einsum('gih,hk->gik', h1, w2)) + b2)
    ref = jnp.mean(h2, axis=1) @ wc + bc

    assert logits.shape == (G, n_classes) and logits.dtype == jnp.float32
    max_err = float(jnp.max(jnp.abs(logits - ref)))
    scale = float(jnp.max(jnp.abs(ref))) + 1e-6
    assert max_err <= 0.03 * scale + 1e-3, (max_err, scale)
    print("KERNEL_OK")
</pallas_src>

<mosaic_0001>
module attributes {stable_mosaic.version = 11 : i64} {
  func.func @classifier_kernel(%arg0: i32, %arg1: memref<4x64x64xbf16, #tpu.memory_space<vmem>>, %arg2: memref<4x64x1xf32, #tpu.memory_space<vmem>>, %arg3: memref<1x32xf32, #tpu.memory_space<vmem>>, %arg4: memref<1x32xf32, #tpu.memory_space<vmem>>, %arg5: memref<32x32xbf16, #tpu.memory_space<vmem>>, %arg6: memref<1x32xf32, #tpu.memory_space<vmem>>, %arg7: memref<32x128xf32, #tpu.memory_space<vmem>>, %arg8: memref<1x128xf32, #tpu.memory_space<vmem>>, %arg9: memref<1x4x128xf32, #tpu.memory_space<vmem>>) attributes {dimension_semantics = [#tpu.dimension_semantics<parallel>], iteration_bounds = array<i64: 2>, scalar_prefetch = 0 : i64, scratch_operands = 0 : i64, tpu.core_type = #tpu.core_type<tc>, window_params = [{transform_indices = @transform_0, window_bounds = array<i64: 4, 64, 64>}, {transform_indices = @transform_1, window_bounds = array<i64: 4, 64, 1>}, {pipeline_mode = #tpu.pipeline_mode<synchronous>, transform_indices = @transform_2, window_bounds = array<i64: 1, 32>}, {pipeline_mode = #tpu.pipeline_mode<synchronous>, transform_indices = @transform_3, window_bounds = array<i64: 1, 32>}, {pipeline_mode = #tpu.pipeline_mode<synchronous>, transform_indices = @transform_4, window_bounds = array<i64: 32, 32>}, {pipeline_mode = #tpu.pipeline_mode<synchronous>, transform_indices = @transform_5, window_bounds = array<i64: 1, 32>}, {pipeline_mode = #tpu.pipeline_mode<synchronous>, transform_indices = @transform_6, window_bounds = array<i64: 32, 128>}, {pipeline_mode = #tpu.pipeline_mode<synchronous>, transform_indices = @transform_7, window_bounds = array<i64: 1, 128>}, {transform_indices = @transform_8, window_bounds = array<i64: 1, 4, 128>}]} {
    %c0 = arith.constant 0 : index
    %c0_0 = arith.constant 0 : index
    %c0_1 = arith.constant 0 : index
    %0 = vector.load %arg1[%c0, %c0_0, %c0_1] : memref<4x64x64xbf16, #tpu.memory_space<vmem>>, vector<4x64x64xbf16>
    %c0_2 = arith.constant 0 : index
    %c0_3 = arith.constant 0 : index
    %c0_4 = arith.constant 0 : index
    %1 = vector.load %arg2[%c0_2, %c0_3, %c0_4] : memref<4x64x1xf32, #tpu.memory_space<vmem>>, vector<4x64x1xf32>
    %cst = arith.constant 1.000000e+00 : f32
    %2 = vector.broadcast %cst : f32 to vector<4x64x1xf32>
    %3 = arith.maximumf %1, %2 : vector<4x64x1xf32>
    %4 = math.rsqrt %3 : vector<4x64x1xf32>
    %c0_5 = arith.constant 0 : index
    %c0_6 = arith.constant 0 : index
    %5 = vector.load %arg3[%c0_5, %c0_6] : memref<1x32xf32, #tpu.memory_space<vmem>>, vector<1x32xf32>
    %6 = vector.shape_cast %5 : vector<1x32xf32> to vector<1x1x32xf32>
    %7 = vector.broadcast %1 : vector<4x64x1xf32> to vector<4x64x32xf32>
    %8 = vector.broadcast %6 : vector<1x1x32xf32> to vector<4x64x32xf32>
    %9 = arith.mulf %7, %8 : vector<4x64x32xf32>
    %10 = vector.broadcast %4 : vector<4x64x1xf32> to vector<4x64x32xf32>
    %11 = arith.mulf %10, %9 : vector<4x64x32xf32>
    %12 = arith.truncf %11 : vector<4x64x32xf32> to vector<4x64x32xbf16>
    "tpu.trace_start"() <{level = 10 : i32, message = "bij,bjh->bih"}> : () -> ()
    %cst_7 = arith.constant dense<0.000000e+00> : vector<4x64x32xf32>
    %13 = tpu.matmul %0, %12, %cst_7 {dimension_numbers = #tpu.dot_dimension_numbers<[2], [1], [1], [2], [0, 0, 0, 1, 1, 2], [0], [0]>} : vector<4x64x64xbf16>, vector<4x64x32xbf16>, vector<4x64x32xf32> -> vector<4x64x32xf32>
    "tpu.trace_stop"() : () -> ()
    %14 = vector.broadcast %4 : vector<4x64x1xf32> to vector<4x64x32xf32>
    %15 = arith.mulf %14, %13 : vector<4x64x32xf32>
    %c0_8 = arith.constant 0 : index
    %c0_9 = arith.constant 0 : index
    %16 = vector.load %arg4[%c0_8, %c0_9] : memref<1x32xf32, #tpu.memory_space<vmem>>, vector<1x32xf32>
    %17 = vector.shape_cast %16 : vector<1x32xf32> to vector<1x1x32xf32>
    %18 = vector.broadcast %17 : vector<1x1x32xf32> to vector<4x64x32xf32>
    %19 = arith.addf %15, %18 : vector<4x64x32xf32>
    %cst_10 = arith.constant 0.000000e+00 : f32
    %20 = vector.broadcast %cst_10 : f32 to vector<4x64x32xf32>
    %21 = arith.maximumf %19, %20 : vector<4x64x32xf32>
    %22 = vector.shape_cast %21 : vector<4x64x32xf32> to vector<256x32xf32>
    %23 = arith.truncf %22 : vector<256x32xf32> to vector<256x32xbf16>
    %c0_11 = arith.constant 0 : index
    %c0_12 = arith.constant 0 : index
    %24 = vector.load %arg5[%c0_11, %c0_12] : memref<32x32xbf16, #tpu.memory_space<vmem>>, vector<32x32xbf16>
    %cst_13 = arith.constant dense<0.000000e+00> : vector<256x32xf32>
    %25 = tpu.matmul %23, %24, %cst_13 {dimension_numbers = #tpu.dot_dimension_numbers<[1], [0], [0], [1], [0, 0, 1, 1], [], []>} : vector<256x32xbf16>, vector<32x32xbf16>, vector<256x32xf32> -> vector<256x32xf32>
    %26 = vector.shape_cast %25 : vector<256x32xf32> to vector<4x64x32xf32>
    %27 = vector.broadcast %4 : vector<4x64x1xf32> to vector<4x64x32xf32>
    %28 = arith.mulf %27, %26 : vector<4x64x32xf32>
    %29 = arith.truncf %28 : vector<4x64x32xf32> to vector<4x64x32xbf16>
    "tpu.trace_start"() <{level = 10 : i32, message = "bij,bjh->bih"}> : () -> ()
    %cst_14 = arith.constant dense<0.000000e+00> : vector<4x64x32xf32>
    %30 = tpu.matmul %0, %29, %cst_14 {dimension_numbers = #tpu.dot_dimension_numbers<[2], [1], [1], [2], [0, 0, 0, 1, 1, 2], [0], [0]>} : vector<4x64x64xbf16>, vector<4x64x32xbf16>, vector<4x64x32xf32> -> vector<4x64x32xf32>
    "tpu.trace_stop"() : () -> ()
    %31 = vector.broadcast %4 : vector<4x64x1xf32> to vector<4x64x32xf32>
    %32 = arith.mulf %31, %30 : vector<4x64x32xf32>
    %c0_15 = arith.constant 0 : index
    %c0_16 = arith.constant 0 : index
    %33 = vector.load %arg6[%c0_15, %c0_16] : memref<1x32xf32, #tpu.memory_space<vmem>>, vector<1x32xf32>
    %34 = vector.shape_cast %33 : vector<1x32xf32> to vector<1x1x32xf32>
    %35 = vector.broadcast %34 : vector<1x1x32xf32> to vector<4x64x32xf32>
    %36 = arith.addf %32, %35 : vector<4x64x32xf32>
    %cst_17 = arith.constant 0.000000e+00 : f32
    %37 = vector.broadcast %cst_17 : f32 to vector<4x64x32xf32>
    %38 = arith.maximumf %36, %37 : vector<4x64x32xf32>
    %cst_18 = arith.constant dense<0.000000e+00> : vector<4x32xf32>
    %39 = vector.multi_reduction <add>, %38, %cst_18 [1] : vector<4x64x32xf32> to vector<4x32xf32>
    %cst_19 = arith.constant 6.400000e+01 : f32
    %40 = vector.broadcast %cst_19 : f32 to vector<4x32xf32>
    %41 = arith.divf %39, %40 : vector<4x32xf32>
    %c0_20 = arith.constant 0 : index
    %c0_21 = arith.constant 0 : index
    %42 = vector.load %arg7[%c0_20, %c0_21] : memref<32x128xf32, #tpu.memory_space<vmem>>, vector<32x128xf32>
    %cst_22 = arith.constant dense<0.000000e+00> : vector<4x128xf32>
    %43 = tpu.matmul %41, %42, %cst_22 {dimension_numbers = #tpu.dot_dimension_numbers<[1], [0], [0], [1], [0, 0, 1, 1], [], []>} : vector<4x32xf32>, vector<32x128xf32>, vector<4x128xf32> -> vector<4x128xf32>
    %c0_23 = arith.constant 0 : index
    %c0_24 = arith.constant 0 : index
    %44 = vector.load %arg8[%c0_23, %c0_24] : memref<1x128xf32, #tpu.memory_space<vmem>>, vector<1x128xf32>
    %45 = vector.broadcast %44 : vector<1x128xf32> to vector<4x128xf32>
    %46 = arith.addf %43, %45 : vector<4x128xf32>
    %c0_25 = arith.constant 0 : index
    %c0_26 = arith.constant 0 : index
    %c0_27 = arith.constant 0 : index
    %47 = vector.load %arg9[%c0_25, %c0_26, %c0_27] : memref<1x4x128xf32, #tpu.memory_space<vmem>>, vector<1x4x128xf32>
    %48 = vector.shape_cast %47 : vector<1x4x128xf32> to vector<4x128xf32>
    %49 = vector.shape_cast %46 : vector<4x128xf32> to vector<1x4x128xf32>
    tpu.vector_store %arg9[%c0_25, %c0_26, %c0_27], %49 {strides = array<i32>} : memref<1x4x128xf32, #tpu.memory_space<vmem>>, vector<1x4x128xf32>,
    return
  }
  func.func @transform_0(%arg0: i32) -> (i32, i32, i32) {
    %c0_i32 = arith.constant 0 : i32
    %c0_i32_0 = arith.constant 0 : i32
    %c0_i32_1 = arith.constant 0 : i32
    return %arg0, %c0_i32, %c0_i32_0 : i32, i32, i32
  }
  func.func @transform_1(%arg0: i32) -> (i32, i32, i32) {
    %c0_i32 = arith.constant 0 : i32
    %c0_i32_0 = arith.constant 0 : i32
    %c0_i32_1 = arith.constant 0 : i32
    return %arg0, %c0_i32, %c0_i32_0 : i32, i32, i32
  }
  func.func @transform_2(%arg0: i32) -> (i32, i32) {
    %c0_i32 = arith.constant 0 : i32
    %c0_i32_0 = arith.constant 0 : i32
    %c0_i32_1 = arith.constant 0 : i32
    return %c0_i32, %c0_i32_0 : i32, i32
  }
  func.func @transform_3(%arg0: i32) -> (i32, i32) {
    %c0_i32 = arith.constant 0 : i32
    %c0_i32_0 = arith.constant 0 : i32
    %c0_i32_1 = arith.constant 0 : i32
    return %c0_i32, %c0_i32_0 : i32, i32
  }
  func.func @transform_4(%arg0: i32) -> (i32, i32) {
    %c0_i32 = arith.constant 0 : i32
    %c0_i32_0 = arith.constant 0 : i32
    %c0_i32_1 = arith.constant 0 : i32
    return %c0_i32, %c0_i32_0 : i32, i32
  }
  func.func @transform_5(%arg0: i32) -> (i32, i32) {
    %c0_i32 = arith.constant 0 : i32
    %c0_i32_0 = arith.constant 0 : i32
    %c0_i32_1 = arith.constant 0 : i32
    return %c0_i32, %c0_i32_0 : i32, i32
  }
  func.func @transform_6(%arg0: i32) -> (i32, i32) {
    %c0_i32 = arith.constant 0 : i32
    %c0_i32_0 = arith.constant 0 : i32
    %c0_i32_1 = arith.constant 0 : i32
    return %c0_i32, %c0_i32_0 : i32, i32
  }
  func.func @transform_7(%arg0: i32) -> (i32, i32) {
    %c0_i32 = arith.constant 0 : i32
    %c0_i32_0 = arith.constant 0 : i32
    %c0_i32_1 = arith.constant 0 : i32
    return %c0_i32, %c0_i32_0 : i32, i32
  }
  func.func @transform_8(%arg0: i32) -> (i32, i32, i32) {
    %c0_i32 = arith.constant 0 : i32
    %c0_i32_0 = arith.constant 0 : i32
    %c0_i32_1 = arith.constant 0 : i32
    return %arg0, %c0_i32, %c0_i32_0 : i32, i32, i32
  }
}

</mosaic_0001>

<bundles_post_ra>
// kernel: tpu_custom_call.1
= control target key start
LH: loop header
LB: loop body
LE: loop exit
PB: predicated region body
PF: predicated region fallthrough
CT: control target
= control target key end

     0   :  { %13 = vsyncpa [#allocation3], 0  ;;  %s4038_s0 = inlined_call_operand.vmem [shape: bf16[8,64,64], index: 0, kind: input, shape index: {}]   ;;  %s4039_s1 = inlined_call_operand.vmem [shape: f32[8,64,1], index: 1, kind: input, shape index: {}]   ;;  %s4040_s2 = inlined_call_operand.vmem [shape: f32[1,32], index: 2, kind: input, shape index: {}]   ;;  %s4041_s3 = inlined_call_operand.vmem [shape: f32[1,32], index: 3, kind: input, shape index: {}]   ;;  %s4042_s4 = inlined_call_operand.vmem [shape: bf16[32,32], index: 4, kind: input, shape index: {}]   ;;  %s4043_s5 = inlined_call_operand.vmem [shape: f32[1,32], index: 5, kind: input, shape index: {}]   ;;  %s4044_s6 = inlined_call_operand.vmem [shape: f32[32,128], index: 6, kind: input, shape index: {}]   ;;  %s4045_s7 = inlined_call_operand.vmem [shape: f32[1,128], index: 7, kind: input, shape index: {}]   ;;  %s4046_s8 = inlined_call_operand.hbm [shape: f32[2,4,128], index: 8, kind: output, shape index: {}]  }
   0x1   :  { %15 = vsyncpa [#allocation3 + $0x1], 0  ;;  %s2768_s27 = smov 0   ;;  %s2770_s28 = smov 0  }
   0x2   :  { %s2772_s29 = smov 0   ;;  %s2774_s30 = smov 0  }
   0x3 LB: > { %s2380_s9 = sadd.s32 4294967295, %s2719_s30   ;;  %s2381_s10 = sadd.s32 4294967294, %s2719_s30   ;;  %s2719_s30 = sphi %s2774_s30, %s4143_s30   ;;  %s2715_s29 = sphi %s2772_s29, %s4142_s29   ;;  %s2711_s28 = sphi %s2770_s28, %s4141_s28   ;;  %s2707_s27 = sphi %s2768_s27, %s4140_s27  }
   0x4   : > { %s2791_s11 = sadd.s32 1, %s2719_s30   ;;  %s206_s12 = sadd.s32 1, %s2715_s29 }
   0x5   : > { %s203_s13 = ssub.s32 %s2719_s30, %s2791_s11  ;;  %p216_p0 = scmp.ne.s32.totalorder %s2715_s29, %s2711_s28 }
   0x6   : > { %p204_p1 = scmp.eq.s32.totalorder %s203_s13, 0  ;;  %p217_p2 = scmp.eq.s32.totalorder %s2380_s9, 1 }
   0x7   : > { %p222_p3 = scmp.ne.s32.totalorder %s2711_s28, %s2707_s27  ;;  %p223_p4 = scmp.eq.s32.totalorder %s2381_s10, 1 }
   0x8   : > { %s2801_s14 = scalar_select %p204_p1, %s2715_s29, %s206_s12  }
   0x9   : > { %p2803_p5 = por %p217_p2, %p216_p0  ;;  %p2807_p6 = por %p223_p4, %p222_p3 }
   0xa   : > { %p2384_p7 = scmp.ge.s32.totalorder %s2719_s30, 1  ;;  %p279_p8 = scmp.lt.s32.totalorder %s2719_s30, 3 }
   0xc   : > { %p280_p9 = pnand %p2384_p7, %p279_p8 }
   0xe   : > { %283 = sbr.rel (%p280_p9) target bundleno = 1022 (0x3fe), region = 52 }
  0x13   : > { %s2813_s17 = sshll.u32 %s2380_s9, 2  ;;  %v2721_v0 = vmov 0  }
  0x14   : > { %2585 = vset.pattern.permute.xlu1 %v2721_v0  ;;  %2584 = vset.pattern.permute.xlu0 %v2721_v0  ;;  %p321_p10 = scmp.lt.s32.totalorder %s2813_s17, 7  ;;  %s2305_s23 = scalar_lea.hbm %s4046_s8, %s2813_s17 }
  0x15   : > { %2586 = vset.pattern.permute.xlu2 %v2721_v0 }
  0x16   : > { %s2817_s18 = scalar_select %p321_p10, %s2813_s17, 7 }
  0x18   : > { %s2518_s19 = sshll.u32 %s2817_s18, 6  ;;  %s2517_s25 = sshll.u32 %s2817_s18, 5 }
  0x19   : > { %s2823_s22 = scalar_lea.vmem %s4039_s1, %s2518_s19  ;;  %s3564_s10 = scalar_lea.vmem %s4038_s0, %s2517_s25 }
  0x1a   : > { %v389_v1 = vld [vmem:[%s2823_s22 + $0xb0] sm:$0xff]  ;;  %v387_v3 = vld [vmem:[%s2823_s22 + $0xa0] sm:$0xff]  ;;  %v390_v7 = vld [vmem:[%s2823_s22 + $0xb8] sm:$0xff]  ;;  %s317_s19 = sand.u32 1, %s2711_s28  }
  0x1b   : > { %v373_v2 = vld [vmem:[%s2823_s22 + $0x30] sm:$0xff]  ;;  %864 = vperm.xlu0 %2584, %v389_v1   ;;  %v2828_v4 = vmax.f32 %v389_v1, 1.0  ;;  %v2832_v6 = vmax.f32 %v387_v3, 1.0  ;;  %v374_v8 = vld [vmem:[%s2823_s22 + $0x38] sm:$0xff]  ;;  %854 = vperm.xlu2 %2586, %v387_v3   ;;  %v2836_v9 = vmax.f32 %v390_v7, 1.0  ;;  %v388_v10 = vld [vmem:[%s2823_s22 + $0xa8] sm:$0xff] }
  0x1c   : > { %784 = vperm.xlu1 %2585, %v373_v2   ;;  %v2830_v5 = vmax.f32 %v373_v2, 1.0  ;;  %v2840_v11 = vmax.f32 %v374_v8, 1.0  ;;  %v372_v12 = vld [vmem:[%s2823_s22 + $0x28] sm:$0xff]  ;;  %v371_v13 = vld [vmem:[%s2823_s22 + $0x20] sm:$0xff]  ;;  %v2848_v15 = vmax.f32 %v388_v10, 1.0  ;;  %v2861_v20 = vld [vmem:[%s2823_s22 + $0x90] sm:$0xff] }
  0x1d   : > { %2591 = vrsqrt.f32 %v2828_v4  ;;  %v2845_v14 = vmax.f32 %v372_v12, 1.0  ;;  %v2851_v16 = vmax.f32 %v371_v13, 1.0  ;;  %vm657_vm0 = vweird.f32 %v2828_v4  ;;  %v2875_v26 = vld [vmem:[%s2823_s22 + $0x98] sm:$0xff]  ;;  %v2900_v43 = vld [vmem:[%s2823_s22 + $0x10] sm:$0xff]  ;;  %v3028_v46 = vld [vmem:[%s2823_s22] sm:$0xff]  ;;  %s2385_s20 = sshll.u32 %s317_s19, 2 }
  0x1e   : > { %2593 = vrsqrt.f32 %v2830_v5  ;;  %vm497_vm1 = vweird.f32 %v2830_v5  ;;  %vm507_vm2 = vweird.f32 %v2840_v11  ;;  %vm667_vm3 = vweird.f32 %v2836_v9  ;;  %v2943_v1 = vld [vmem:[%s2823_s22 + $0x18] sm:$0xff]  ;;  %s319_s26 = scalar_lea.vmem [#allocation2], %s2385_s20  ;;  %s2295_s12 = scalar_lea.sflag [#allocation3], %s317_s19 }
  0x1f   : > { %2595 = vrsqrt.f32 %v2832_v6  ;;  %v2882_v30 = vmax.f32 %v2861_v20, 1.0  ;;  %v2893_v38 = vmax.f32 %v2875_v26, 1.0  ;;  %v2925_v57 = vmax.f32 %v2900_v43, 1.0  ;;  %s2307_s9 = sshll.u32 %s319_s26, 4  ;;  %s2308_s9 = int_to_ptr.vmem [resolvable:$true] %s2307_s9 }
  0x20   : > { %2597 = vrsqrt.f32 %v2836_v9  ;;  %vm637_vm12 = vweird.f32 %v2832_v6  ;;  %vm647_vm14 = vweird.f32 %v2848_v15 }
  0x21   : > { %2599 = vrsqrt.f32 %v2840_v11 }
  0x22   : > { %2601 = vrsqrt.f32 %v2845_v14 }
  0x23   : > { %v2592_v17 = vpop.eup %2591  ;;  %869 = vperm.xlu0 %2584, %v390_v7   ;;  %2603 = vrsqrt.f32 %v2848_v15  ;;  %779 = vperm.xlu2 %2586, %v372_v12  }
  0x24   : > { %789 = vperm.xlu1 %2585, %v374_v8   ;;  %v2856_v18 = vpop.eup %2593  ;;  %v652_v19 = vmul.f32 %v2592_v17, %v2828_v4  ;;  %2605 = vrsqrt.f32 %v2851_v16  ;;  %vm658_vm4 = vweird.f32 %v2592_v17 }
  0x25   : > { %v2863_v21 = vpop.eup %2595  ;;  %v492_v22 = vmul.f32 %v2856_v18, %v2830_v5  ;;  %vm498_vm5 = vweird.f32 %v2856_v18  ;;  %vm2907_vm7 = vmor %vm657_vm0, %vm658_vm4  ;;  %2607 = vrsqrt.f32 %v2882_v30 }
  0x26   : > { %v2868_v23 = vpop.eup %2597  ;;  %v653_v24 = vmul.f32 %v2592_v17, %v652_v19  ;;  %v632_v25 = vmul.f32 %v2863_v21, %v2832_v6  ;;  %vm2917_vm8 = vmor %vm497_vm1, %vm498_vm5  ;;  %vm638_vm13 = vweird.f32 %v2863_v21  ;;  %2609 = vrsqrt.f32 %v2893_v38  ;;  %v3106_v19 = vld [vmem:[%s2823_s22 + $0x70] sm:$0xff] }
  0x27   : > { %v2600_v27 = vpop.eup %2599  ;;  %v493_v28 = vmul.f32 %v2856_v18, %v492_v22  ;;  %v662_v29 = vmul.f32 %v2868_v23, %v2836_v9  ;;  %vm668_vm9 = vweird.f32 %v2868_v23  ;;  %2611 = vrsqrt.f32 %v2925_v57  ;;  %vm2967_vm0 = vmor %vm637_vm12, %vm638_vm13 }
  0x28   : > { %v2884_v31 = vpop.eup %2601  ;;  %v654_v32 = vmul.f32 0.5, %v653_v24  ;;  %v633_v33 = vmul.f32 %v2863_v21, %v632_v25  ;;  %v502_v34 = vmul.f32 %v2600_v27, %v2840_v11  ;;  %vm508_vm6 = vweird.f32 %v2600_v27  ;;  %vm2948_vm11 = vmor %vm667_vm3, %vm668_vm9 }
  0x29   : > { %v2888_v35 = vpop.eup %2603  ;;  %v494_v36 = vmul.f32 0.5, %v493_v28  ;;  %v663_v37 = vmul.f32 %v2868_v23, %v662_v29  ;;  %v482_v49 = vmul.f32 %v2884_v31, %v2845_v14  ;;  %vm2936_vm10 = vmor %vm507_vm2, %vm508_vm6  ;;  %vm477_vm2 = vweird.f32 %v2851_v16 }
  0x2a   : > { %v2895_v39 = vpop.eup %2605  ;;  %v642_v40 = vmul.f32 %v2888_v35, %v2848_v15  ;;  %v655_v41 = vsub.f32 1.5, %v654_v32  ;;  %v503_v42 = vmul.f32 %v2600_v27, %v502_v34  ;;  %v634_v44 = vmul.f32 0.5, %v633_v33 }
  0x2b   : > { %859 = vperm.xlu0 %2584, %v388_v10   ;;  %v472_v45 = vmul.f32 %v2895_v39, %v2851_v16  ;;  %v495_v47 = vsub.f32 1.5, %v494_v36  ;;  %v664_v48 = vmul.f32 0.5, %v663_v37  ;;  %v483_v5 = vmul.f32 %v2884_v31, %v482_v49  ;;  %v3031_v49 = vld [vmem:[%s2823_s22 + $0x8] sm:$0xff] }
  0x2c   : > { %774 = vperm.xlu1 %2585, %v371_v13   ;;  %v656_v50 = vmul.f32 %v2592_v17, %v655_v41  ;;  %v504_v52 = vmul.f32 0.5, %v503_v42  ;;  %v643_v53 = vmul.f32 %v2888_v35, %v642_v40  ;;  %v635_v0 = vsub.f32 1.5, %v634_v44  ;;  %v3019_v42 = vld [vmem:[%s2823_s22 + $0x88] sm:$0xff] }
  0x2d   : > { %v496_v54 = vmul.f32 %v2856_v18, %v495_v47  ;;  %v665_v55 = vsub.f32 1.5, %v664_v48  ;;  %v473_v56 = vmul.f32 %v2895_v39, %v472_v45  ;;  %vm648_vm15 = vweird.f32 %v2888_v35 }
  0x2e   : > { %v660_v58 = vsel %vm2907_vm7, %v2592_v17, %v656_v50  ;;  %v505_v59 = vsub.f32 1.5, %v504_v52  ;;  %v644_v60 = vmul.f32 0.5, %v643_v53  ;;  %v2960_v10 = vmax.f32 %v2943_v1, 1.0  ;;  %vm2976_vm1 = vmor %vm647_vm14, %vm648_vm15 }
  0x2f   : > { %1059 = vperm.xlu2 %2586, %v660_v58   ;;  %v500_v61 = vsel %vm2917_vm8, %v2856_v18, %v496_v54  ;;  %v666_v63 = vmul.f32 %v2868_v23, %v665_v55  ;;  %v474_v4 = vmul.f32 0.5, %v473_v56  ;;  %v636_v9 = vmul.f32 %v2863_v21, %v635_v0  ;;  %v2972_v18 = vpop.eup %2607 }
  0x30   : > { %v506_v2 = vmul.f32 %v2600_v27, %v505_v59  ;;  %v645_v3 = vsub.f32 1.5, %v644_v60  ;;  %v484_v17 = vmul.f32 0.5, %v483_v5  ;;  %vm478_vm3 = vweird.f32 %v2895_v39 }
  0x31   : > { %v670_v6 = vsel %vm2948_vm11, %v2868_v23, %v666_v63  ;;  %v475_v13 = vsub.f32 1.5, %v474_v4  ;;  %2613 = vrsqrt.f32 %v2960_v10  ;;  %v640_v22 = vsel %vm2967_vm0, %v2863_v21, %v636_v9  ;;  %v2986_v23 = vpop.eup %2609  ;;  %vm479_vm4 = vmor %vm477_vm2, %vm478_vm3  ;;  %v3087_v4 = vld [vmem:[%s2823_s22 + $0xf0] sm:$0xff]  ;;  %v3095_v9 = vld [vmem:[%s2823_s22 + $0xf8] sm:$0xff] }
  0x32   : > { %v510_v8 = vsel %vm2936_vm10, %v2600_v27, %v506_v2  ;;  %v646_v12 = vmul.f32 %v2888_v35, %v645_v3  ;;  %v485_v25 = vsub.f32 1.5, %v484_v17  ;;  %v612_v16 = vmul.f32 %v2972_v18, %v2882_v30  ;;  %v2994_v27 = vpop.eup %2611 }
  0x33   : > { %979 = vperm.xlu0 %2584, %v500_v61   ;;  %v476_v24 = vmul.f32 %v2895_v39, %v475_v13  ;;  %vm487_vm5 = vweird.f32 %v2845_v14  ;;  %vm488_vm6 = vweird.f32 %v2884_v31  ;;  %v622_v21 = vmul.f32 %v2986_v23, %v2893_v38  ;;  %v3008_v14 = vld [vmem:[%s2823_s22 + $0x80] sm:$0xff] }
  0x34   : > { %984 = vperm.xlu1 %2585, %v510_v8   ;;  %v650_v15 = vsel %vm2976_vm1, %v2888_v35, %v646_v12  ;;  %v486_v32 = vmul.f32 %v2884_v31, %v485_v25  ;;  %v452_v33 = vmul.f32 %v2994_v27, %v2925_v57  ;;  %v613_v34 = vmul.f32 %v2972_v18, %v612_v16  ;;  %vm489_vm7 = vmor %vm487_vm5, %vm488_vm6  ;;  %v3119_v16 = vld [vmem:[%s2823_s22 + $0x78] sm:$0xff] }
  0x35   : > { %v480_v29 = vsel %vm479_vm4, %v2895_v39, %v476_v24  ;;  %v3013_v36 = vmax.f32 %v3008_v14, 1.0  ;;  %v623_v40 = vmul.f32 %v2986_v23, %v622_v21  ;;  %v3025_v45 = vmax.f32 %v3019_v42, 1.0 }
  0x36   : > { %v490_v37 = vsel %vm489_vm7, %v2884_v31, %v486_v32  ;;  %v614_v39 = vmul.f32 0.5, %v613_v34  ;;  %v453_v41 = vmul.f32 %v2994_v27, %v452_v33  ;;  %vm617_vm8 = vweird.f32 %v2882_v30 }
  0x37   : > { %1064 = vperm.xlu2 %2586, %v670_v6   ;;  %v3000_v28 = vpop.eup %2613  ;;  %2615 = vrsqrt.f32 %v3013_v36  ;;  %v624_v47 = vmul.f32 0.5, %v623_v40  ;;  %vm618_vm9 = vweird.f32 %v2972_v18  ;;  %v3041_v51 = vmax.f32 %v3031_v49, 1.0 }
  0x38   : > { %v462_v35 = vmul.f32 %v3000_v28, %v2960_v10  ;;  %v615_v31 = vsub.f32 1.5, %v614_v39  ;;  %v454_v48 = vmul.f32 0.5, %v453_v41  ;;  %2617 = vrsqrt.f32 %v3025_v45  ;;  %vm3046_vm10 = vmor %vm617_vm8, %vm618_vm9 }
  0x39   : > { %v625_v53 = vsub.f32 1.5, %v624_v47  ;;  %vm627_vm11 = vweird.f32 %v2893_v38  ;;  %vm628_vm12 = vweird.f32 %v2986_v23  ;;  %vm457_vm13 = vweird.f32 %v2925_v57 }
  0x3a   : > { %v463_v44 = vmul.f32 %v3000_v28, %v462_v35  ;;  %v616_v52 = vmul.f32 %v2972_v18, %v615_v31  ;;  %v455_v54 = vsub.f32 1.5, %v454_v48  ;;  %vm458_vm14 = vweird.f32 %v2994_v27  ;;  %vm3062_vm15 = vmor %vm627_vm11, %vm628_vm12  ;;  %v3168_v48 = vld [vmem:[%s2823_s22 + $0xe0] sm:$0xff] }
  0x3b   : > { %1049 = vperm.xlu0 %2584, %v640_v22   ;;  %v626_v38 = vmul.f32 %v2986_v23, %v625_v53  ;;  %vm459_vm0 = vmor %vm457_vm13, %vm458_vm14  ;;  %vm467_vm1 = vweird.f32 %v2960_v10  ;;  %vm468_vm2 = vweird.f32 %v3000_v28  ;;  %v3098_v6 = vmax.f32 %v3087_v4, 1.0 }
  0x3c   : > { %1054 = vperm.xlu1 %2585, %v650_v15   ;;  %v464_v50 = vmul.f32 0.5, %v463_v44  ;;  %v620_v56 = vsel %vm3046_vm10, %v2972_v18, %v616_v52  ;;  %v456_v57 = vmul.f32 %v2994_v27, %v455_v54  ;;  %vm469_vm3 = vmor %vm467_vm1, %vm468_vm2  ;;  %v3101_v11 = vmax.f32 %v3095_v9, 1.0 }
  0x3d   : > { %v3044_v55 = vpop.eup %2615  ;;  %v630_v62 = vsel %vm3062_vm15, %v2986_v23, %v626_v38  ;;  %vm597_vm4 = vweird.f32 %v3013_v36  ;;  %v3114_v22 = vmax.f32 %v3106_v19, 1.0  ;;  %vm607_vm7 = vweird.f32 %v3025_v45 }
  0x3e   : > { %v592_v59 = vmul.f32 %v3044_v55, %v3013_v36  ;;  %v3069_v60 = vpop.eup %2617  ;;  %v460_v63 = vsel %vm459_vm0, %v2994_v27, %v456_v57  ;;  %vm598_vm5 = vweird.f32 %v3044_v55  ;;  %v3130_v21 = vmax.f32 %v3119_v16, 1.0 }
  0x3f   : > { %969 = vperm.xlu2 %2586, %v480_v29   ;;  %v602_v0 = vmul.f32 %v3069_v60, %v3025_v45  ;;  %vm3121_vm6 = vmor %vm597_vm4, %vm598_vm5  ;;  %vm608_vm8 = vweird.f32 %v3069_v60  ;;  %vm447_vm10 = vweird.f32 %v3041_v51  ;;  %vm737_vm0 = vweird.f32 %v3098_v6 }
  0x40   : > { %vm3140_vm9 = vmor %vm607_vm7, %vm608_vm8  ;;  %vm747_vm2 = vweird.f32 %v3101_v11 }
  0x41   : > { %v603_v10 = vmul.f32 %v3069_v60, %v602_v0 }
  0x43   : > { %974 = vperm.xlu0 %2584, %v490_v37   ;;  %v604_v13 = vmul.f32 0.5, %v603_v10 }
  0x44   : > { %844 = vperm.xlu1 %2585, %v2861_v20   ;;  %v3036_v20 = vmax.f32 %v3028_v46, 1.0 }
  0x45   : > { %v605_v15 = vsub.f32 1.5, %v604_v13 }
  0x46   : > { %2619 = vrsqrt.f32 %v3036_v20  ;;  %vm437_vm12 = vweird.f32 %v3036_v20 }
  0x47   : > { %849 = vperm.xlu2 %2586, %v2875_v26   ;;  %v465_v26 = vsub.f32 1.5, %v464_v50  ;;  %2621 = vrsqrt.f32 %v3041_v51  ;;  %v606_v32 = vmul.f32 %v3069_v60, %v605_v15  ;;  %v3173_v50 = vmax.f32 %v3168_v48, 1.0 }
  0x48   : > { %2623 = vrsqrt.f32 %v3098_v6 }
  0x49   : > { %2625 = vrsqrt.f32 %v3101_v11  ;;  %v610_v37 = vsel %vm3140_vm9, %v3069_v60, %v606_v32  ;;  %vm587_vm9 = vweird.f32 %v3130_v21 }
  0x4a   : > { %2627 = vrsqrt.f32 %v3114_v22 }
  0x4b   : > { %764 = vperm.xlu0 %2584, %v2900_v43   ;;  %v466_v43 = vmul.f32 %v3000_v28, %v465_v26  ;;  %2629 = vrsqrt.f32 %v3130_v21 }
  0x4c   : > { %769 = vperm.xlu1 %2585, %v2943_v1   ;;  %v3074_v61 = vpop.eup %2619  ;;  %v593_v1 = vmul.f32 %v3044_v55, %v592_v59  ;;  %2631 = vrsqrt.f32 %v3173_v50  ;;  %v3194_v59 = vld [vmem:[%s2823_s22 + $0x68] sm:$0xff] }
  0x4d   : > { %v3083_v2 = vpop.eup %2621  ;;  %v470_v3 = vsel %vm469_vm3, %v3000_v28, %v466_v43  ;;  %v432_v5 = vmul.f32 %v3074_v61, %v3036_v20  ;;  %vm438_vm13 = vweird.f32 %v3074_v61  ;;  %v3206_v43 = vmax.f32 %v3194_v59, 1.0 }
  0x4e   : > { %v594_v7 = vmul.f32 0.5, %v593_v1  ;;  %v442_v8 = vmul.f32 %v3083_v2, %v3041_v51  ;;  %v3132_v28 = vpop.eup %2623  ;;  %vm448_vm11 = vweird.f32 %v3083_v2  ;;  %vm439_vm15 = vmor %vm437_vm12, %vm438_vm13  ;;  %v3176_v51 = vld [vmem:[%s2823_s22 + $0x60] sm:$0xff]  ;;  %vm717_vm12 = vweird.f32 %v3173_v50 }
  0x4f   : > { %1039 = vperm.xlu2 %2586, %v620_v56   ;;  %v433_v18 = vmul.f32 %v3074_v61, %v432_v5  ;;  %v732_v36 = vmul.f32 %v3132_v28, %v3098_v6  ;;  %vm449_vm14 = vmor %vm447_vm10, %vm448_vm11  ;;  %v3185_v30 = vmax.f32 %v3176_v51, 1.0  ;;  %vm738_vm1 = vweird.f32 %v3132_v28 }
  0x50   : > { %v595_v12 = vsub.f32 1.5, %v594_v7  ;;  %v443_v17 = vmul.f32 %v3083_v2, %v442_v8  ;;  %vm3209_vm4 = vmor %vm737_vm0, %vm738_vm1 }
  0x51   : > { %v434_v25 = vmul.f32 0.5, %v433_v18  ;;  %v733_v44 = vmul.f32 %v3132_v28, %v732_v36  ;;  %2633 = vrsqrt.f32 %v3185_v30  ;;  %v3275_v36 = vld [vmem:[%s2823_s22 + $0x50] sm:$0xff] }
  0x52   : > { %v596_v23 = vmul.f32 %v3044_v55, %v595_v12  ;;  %v444_v24 = vmul.f32 0.5, %v443_v17  ;;  %v3243_v12 = vld [vmem:[%s2823_s22 + $0xd0] sm:$0xff] }
  0x53   : > { %1044 = vperm.xlu0 %2584, %v630_v62   ;;  %v435_v34 = vsub.f32 1.5, %v434_v25  ;;  %v734_v20 = vmul.f32 0.5, %v733_v44 }
  0x54   : > { %959 = vperm.xlu1 %2585, %v460_v63   ;;  %v600_v29 = vsel %vm3121_vm6, %v3044_v55, %v596_v23  ;;  %v445_v33 = vsub.f32 1.5, %v444_v24  ;;  %v3182_v55 = vld [vmem:[%s2823_s22 + $0xe8] sm:$0xff]  ;;  %vm577_vm6 = vweird.f32 %v3114_v22  ;;  %v3253_v23 = vmax.f32 %v3243_v12, 1.0 }
  0x55   : > { %v436_v40 = vmul.f32 %v3074_v61, %v435_v34  ;;  %v735_v26 = vsub.f32 1.5, %v734_v20  ;;  %v3190_v56 = vmax.f32 %v3182_v55, 1.0 }
  0x56   : > { %v446_v39 = vmul.f32 %v3083_v2, %v445_v33  ;;  %v3271_v33 = vld [vmem:[%s2823_s22 + $0x58] sm:$0xff] }
  0x57   : > { %964 = vperm.xlu2 %2586, %v470_v3   ;;  %v736_v60 = vmul.f32 %v3132_v28, %v735_v26  ;;  %2635 = vrsqrt.f32 %v3190_v56  ;;  %vm727_vm1 = vweird.f32 %v3190_v56 }
  0x58   : > { %v450_v45 = vsel %vm449_vm14, %v3083_v2, %v446_v39  ;;  %2637 = vrsqrt.f32 %v3206_v43  ;;  %v3361_v2 = vld [vmem:[%s2823_s22 + $0xc8] sm:$0xff] }
  0x59   : > { %2639 = vrsqrt.f32 %v3253_v23 }
  0x5b   : > { %834 = vperm.xlu0 %2584, %v3008_v14   ;;  %v3138_v14 = vpop.eup %2625 }
  0x5c   : > { %839 = vperm.xlu1 %2585, %v3019_v42   ;;  %v742_v41 = vmul.f32 %v3138_v14, %v3101_v11  ;;  %v3159_v42 = vpop.eup %2627  ;;  %vm748_vm3 = vweird.f32 %v3138_v14 }
  0x5d   : > { %v572_v31 = vmul.f32 %v3159_v42, %v3114_v22  ;;  %vm3215_vm5 = vmor %vm747_vm2, %vm748_vm3  ;;  %vm578_vm7 = vweird.f32 %v3159_v42 }
  0x5e   : > { %v743_v47 = vmul.f32 %v3138_v14, %v742_v41  ;;  %vm579_vm8 = vmor %vm577_vm6, %vm578_vm7 }
  0x5f   : > { %754 = vperm.xlu2 %2586, %v3028_v46   ;;  %v440_v46 = vsel %vm439_vm15, %v3074_v61, %v436_v40  ;;  %v573_v54 = vmul.f32 %v3159_v42, %v572_v31  ;;  %v3285_v40 = vmax.f32 %v3275_v36, 1.0  ;;  %vm557_vm15 = vweird.f32 %v3185_v30 }
  0x60   : > { %v744_v53 = vmul.f32 0.5, %v743_v47 }
  0x61   : > { %v574_v58 = vmul.f32 0.5, %v573_v54 }
  0x62   : > { %v745_v38 = vsub.f32 1.5, %v744_v53 }
  0x63   : > { %759 = vperm.xlu0 %2584, %v3031_v49   ;;  %v3170_v49 = vpop.eup %2629  ;;  %v575_v63 = vsub.f32 1.5, %v574_v58 }
  0x64   : > { %1029 = vperm.xlu1 %2585, %v600_v29   ;;  %v582_v52 = vmul.f32 %v3170_v49, %v3130_v21  ;;  %v746_v61 = vmul.f32 %v3138_v14, %v745_v38  ;;  %v3213_v1 = vpop.eup %2631  ;;  %vm588_vm10 = vweird.f32 %v3170_v49 }
  0x65   : > { %v3228_v5 = vpop.eup %2633  ;;  %v576_v8 = vmul.f32 %v3159_v42, %v575_v63  ;;  %v712_v10 = vmul.f32 %v3213_v1, %v3173_v50  ;;  %vm589_vm11 = vmor %vm587_vm9, %vm588_vm10  ;;  %vm718_vm13 = vweird.f32 %v3213_v1  ;;  %v3356_v63 = vld [vmem:[%s2823_s22 + $0xc0] sm:$0xff] }
  0x66   : > { %v583_v57 = vmul.f32 %v3170_v49, %v582_v52  ;;  %v750_v7 = vsel %vm3215_vm5, %v3138_v14, %v746_v61  ;;  %v3236_v6 = vpop.eup %2635  ;;  %v552_v11 = vmul.f32 %v3228_v5, %v3185_v30  ;;  %vm3292_vm14 = vmor %vm717_vm12, %vm718_vm13  ;;  %vm558_vm0 = vweird.f32 %v3228_v5 }
  0x67   : > { %1034 = vperm.xlu2 %2586, %v610_v37   ;;  %v580_v13 = vsel %vm579_vm8, %v3159_v42, %v576_v8  ;;  %v722_v18 = vmul.f32 %v3236_v6, %v3190_v56  ;;  %v3250_v22 = vpop.eup %2637  ;;  %v3280_v37 = vmax.f32 %v3271_v33, 1.0  ;;  %vm728_vm2 = vweird.f32 %v3236_v6  ;;  %vm3315_vm3 = vmor %vm557_vm15, %vm558_vm0 }
  0x68   : > { %v584_v0 = vmul.f32 0.5, %v583_v57  ;;  %v553_v24 = vmul.f32 %v3228_v5, %v552_v11  ;;  %v3287_v41 = vpop.eup %2639  ;;  %vm567_vm5 = vweird.f32 %v3206_v43  ;;  %vm568_vm6 = vweird.f32 %v3250_v22 }
  0x69   : > { %v723_v21 = vmul.f32 %v3236_v6, %v722_v18  ;;  %vm3351_vm7 = vmor %vm567_vm5, %vm568_vm6  ;;  %vm697_vm8 = vweird.f32 %v3253_v23  ;;  %vm698_vm9 = vweird.f32 %v3287_v41  ;;  %vm537_vm0 = vweird.f32 %v3285_v40 }
  0x6a   : > { %v554_v29 = vmul.f32 0.5, %v553_v24  ;;  %vm3400_vm10 = vmor %vm697_vm8, %vm698_vm9 }
  0x6b   : > { %949 = vperm.xlu0 %2584, %v440_v46   ;;  %v724_v14 = vmul.f32 0.5, %v723_v21 }
  0x6c   : > { %954 = vperm.xlu1 %2585, %v450_v45   ;;  %v555_v39 = vsub.f32 1.5, %v554_v29 }
  0x6d   : > { %v725_v44 = vsub.f32 1.5, %v724_v14 }
  0x6e   : > { %v556_v47 = vmul.f32 %v3228_v5, %v555_v39 }
  0x6f   : > { %904 = vperm.xlu2 %2586, %v3087_v4   ;;  %v740_v4 = vsel %vm3209_vm4, %v3132_v28, %v736_v60  ;;  %v3263_v28 = vld [vmem:[%s2823_s22 + $0xd8] sm:$0xff]  ;;  %vm3328_vm4 = vmor %vm727_vm1, %vm728_vm2 }
  0x70   : > { %v3268_v32 = vmax.f32 %v3263_v28, 1.0  ;;  %v560_v26 = vsel %vm3315_vm3, %v3228_v5, %v556_v47 }
  0x72   : > { %2641 = vrsqrt.f32 %v3268_v32 }
  0x73   : > { %909 = vperm.xlu0 %2584, %v3095_v9   ;;  %v585_v9 = vsub.f32 1.5, %v584_v0  ;;  %2643 = vrsqrt.f32 %v3280_v37 }
  0x74   : > { %824 = vperm.xlu1 %2585, %v3106_v19   ;;  %v713_v19 = vmul.f32 %v3213_v1, %v712_v10  ;;  %2645 = vrsqrt.f32 %v3285_v40 }
  0x75   : > { %v3219_v3 = vpop.permute.xlu2 %854  ;;  %v586_v17 = vmul.f32 %v3170_v49, %v585_v9 }
  0x76   : > { %v714_v27 = vmul.f32 0.5, %v713_v19 }
  0x77   : > { %829 = vperm.xlu2 %2586, %v3119_v16   ;;  %v590_v25 = vsel %vm589_vm11, %v3170_v49, %v586_v17  ;;  %v562_v16 = vmul.f32 %v3250_v22, %v3206_v43  ;;  %v3310_v49 = vld [vmem:[%s4040_s2] ss:$0 sm:$0xff]  ;;  %vm707_vm11 = vweird.f32 %v3268_v32 }
  0x78   : > { %v715_v34 = vsub.f32 1.5, %v714_v27  ;;  %v3320_v53 = vpop.eup %2641 }
  0x79   : > { %v563_v35 = vmul.f32 %v3250_v22, %v562_v16  ;;  %v3338_v58 = vpop.eup %2643  ;;  %v702_v60 = vmul.f32 %v3320_v53, %v3268_v32  ;;  %v3381_v16 = vld [vmem:[%s2823_s22 + $0x40] sm:$0xff]  ;;  %vm708_vm12 = vweird.f32 %v3320_v53 }
  0x7a   : > { %v716_v42 = vmul.f32 %v3213_v1, %v715_v34  ;;  %v3347_v43 = vpop.eup %2645  ;;  %v3393_v14 = vmax.f32 %v3381_v16, 1.0  ;;  %vm3421_vm13 = vmor %vm707_vm11, %vm708_vm12  ;;  %vm548_vm15 = vweird.f32 %v3338_v58 }
  0x7b   : > { %1099 = vperm.xlu0 %2584, %v740_v4   ;;  %v564_v45 = vmul.f32 0.5, %v563_v35  ;;  %v703_v8 = vmul.f32 %v3320_v53, %v702_v60  ;;  %vm538_vm1 = vweird.f32 %v3347_v43 }
  0x7c   : > { %1104 = vperm.xlu1 %2585, %v750_v7   ;;  %v720_v20 = vsel %vm3292_vm14, %v3213_v1, %v716_v42  ;;  %v542_v1 = vmul.f32 %v3338_v58, %v3280_v37  ;;  %v532_v7 = vmul.f32 %v3347_v43, %v3285_v40  ;;  %vm547_vm14 = vweird.f32 %v3280_v37  ;;  %vm3457_vm3 = vmor %vm537_vm0, %vm538_vm1 }
  0x7d   : > { %v3255_v15 = vpop.permute.xlu2 %779  ;;  %v565_v52 = vsub.f32 1.5, %v564_v45  ;;  %v704_v24 = vmul.f32 0.5, %v703_v8  ;;  %v3396_v45 = vld [vmem:[%s2823_s22 + $0x48] sm:$0xff]  ;;  %vm3442_vm2 = vmor %vm547_vm14, %vm548_vm15  ;;  %vm1215_vm0 = vcmask 523264   ;;  %vm1644_vm1 = vcmask 261120   ;;  %s2677_s22 = scalar_lea.hbm %s4046_s8, 8 }
  0x7e   : > { %v543_v18 = vmul.f32 %v3338_v58, %v542_v1  ;;  %v3411_v50 = vmax.f32 %v3396_v45, 1.0 }
  0x7f   : > { %1019 = vperm.xlu2 %2586, %v580_v13   ;;  %v3375_v13 = vmax.f32 %v3361_v2, 1.0  ;;  %v705_v42 = vsub.f32 1.5, %v704_v24 }
  0x80   : > { %v544_v34 = vmul.f32 0.5, %v543_v18 }
  0x81   : > { %v706_v32 = vmul.f32 %v3320_v53, %v705_v42 }
  0x83   : > { %1024 = vperm.xlu0 %2584, %v590_v25   ;;  %v533_v25 = vmul.f32 %v3347_v43, %v532_v7 }
  0x84   : > { %894 = vperm.xlu1 %2585, %v3168_v48   ;;  %v692_v48 = vmul.f32 %v3287_v41, %v3253_v23 }
  0x86   : > { %v693_v38 = vmul.f32 %v3287_v41, %v692_v48 }
  0x87   : > { %899 = vperm.xlu2 %2586, %v3182_v55  }
  0x88   : > { %v694_v0 = vmul.f32 0.5, %v693_v38 }
  0x89   : > { %v3290_v46 = vpop.permute.xlu2 %1059 }
  0x8a   : > { %4088 = vst [vmem:[#allocation5_spill] sm:$0xff] %v3290_v46  ;;  %v695_v17 = vsub.f32 1.5, %v694_v0 }
  0x8b   : > { %814 = vperm.xlu0 %2584, %v3176_v51   ;;  %v726_v51 = vmul.f32 %v3236_v6, %v725_v44  ;;  %v534_v44 = vmul.f32 0.5, %v533_v25 }
  0x8c   : > { %819 = vperm.xlu1 %2585, %v3194_v59   ;;  %v566_v59 = vmul.f32 %v3250_v22, %v565_v52  ;;  %v696_v29 = vmul.f32 %v3287_v41, %v695_v17 }
  0x8d   : > { %v865_v54 = vpop.permute.xlu0 %864  ;;  %v730_v57 = vsel %vm3328_vm4, %v3236_v6, %v726_v51  ;;  %v3371_v6 = vmax.f32 %v3356_v63, 1.0  ;;  %v535_v52 = vsub.f32 1.5, %v534_v44  ;;  %vm687_vm4 = vweird.f32 %v3375_v13 }
  0x8e   : > { %v3322_v55 = vpop.permute.xlu1 %784  ;;  %v937_v56 = vmul.f32 %v3310_v49, %v865_v54  ;;  %v570_v5 = vsel %vm3351_vm7, %v3250_v22, %v566_v59  ;;  %v700_v51 = vsel %vm3400_vm10, %v3287_v41, %v696_v29  ;;  %vm517_vm10 = vweird.f32 %v3393_v14 }
  0x8f   : > { %1089 = vperm.xlu2 %2586, %v720_v20   ;;  %2647 = vrsqrt.f32 %v3371_v6  ;;  %v545_v20 = vsub.f32 1.5, %v544_v34  ;;  %v921_v37 = vmul.f32 %v3310_v49, %v3322_v55  ;;  %vm677_vm6 = vweird.f32 %v3371_v6 }
  0x90   : > { %v1129_v4 = vmul.f32 %v3290_v46, %v937_v56  ;;  %2649 = vrsqrt.f32 %v3375_v13  ;;  %v710_v56 = vsel %vm3421_vm13, %v3320_v53, %v706_v32  ;;  %vm527_vm13 = vweird.f32 %v3411_v50 }
  0x91   : > { %v3349_v61 = vpop.permute.xlu2 %1064  ;;  %2651 = vrsqrt.f32 %v3393_v14  ;;  %v546_v41 = vmul.f32 %v3338_v58, %v545_v20 }
  0x92   : > { %4095 = vst [vmem:[#allocation6_spill] sm:$0xff] %v3349_v61  ;;  %v1161_v22 = vpack.c.bf16 %v1129_v4, %v1129_v4  ;;  %2653 = vrsqrt.f32 %v3411_v50 }
  0x93   : > { %1094 = vperm.xlu0 %2584, %v730_v57   ;;  %v536_v57 = vmul.f32 %v3347_v43, %v535_v52  ;;  %v550_v1 = vsel %vm3442_vm2, %v3338_v58, %v546_v41  ;;  %v935_v58 = vmul.f32 %v3310_v49, %v3219_v3 }
  0x94   : > { %1009 = vperm.xlu1 %2585, %v560_v26   ;;  %v1376_v35 = vunpack.c.l.b16 %v1161_v22 }
  0x95   : > { %v870_v10 = vpop.permute.xlu0 %869  ;;  %v3406_v48 = vpop.eup %2647  ;;  %v540_v40 = vsel %vm3457_vm3, %v3347_v43, %v536_v57  ;;  %vm2265_vm3 = vcmask 1041409  }
  0x96   : > { %v790_v9 = vpop.permute.xlu1 %789  ;;  %v938_v11 = vmul.f32 %v3310_v49, %v870_v10  ;;  %v3413_v23 = vpop.eup %2649  ;;  %v672_v30 = vmul.f32 %v3406_v48, %v3371_v6  ;;  %vm678_vm7 = vweird.f32 %v3406_v48 }
  0x97   : > { %1014 = vperm.xlu2 %2586, %v570_v5   ;;  %v682_v26 = vmul.f32 %v3413_v23, %v3375_v13  ;;  %v922_v38 = vmul.f32 %v3310_v49, %v790_v9  ;;  %v3447_v59 = vpop.eup %2651  ;;  %vm688_vm5 = vweird.f32 %v3413_v23  ;;  %vm3513_vm9 = vmor %vm677_vm6, %vm678_vm7 }
  0x98   : > { %v1130_v19 = vmul.f32 %v3349_v61, %v938_v11  ;;  %v673_v5 = vmul.f32 %v3406_v48, %v672_v30  ;;  %v512_v10 = vmul.f32 %v3447_v59, %v3393_v14  ;;  %v3473_v9 = vpop.eup %2653  ;;  %vm3504_vm8 = vmor %vm687_vm4, %vm688_vm5  ;;  %vm518_vm11 = vweird.f32 %v3447_v59 }
  0x99   : > { %v3383_v27 = vpop.permute.xlu2 %969  ;;  %v683_v4 = vmul.f32 %v3413_v23, %v682_v26  ;;  %v522_v25 = vmul.f32 %v3473_v9, %v3411_v50  ;;  %vm3528_vm12 = vmor %vm517_vm10, %vm518_vm11  ;;  %vm528_vm14 = vweird.f32 %v3473_v9  ;;  %vm2267_vm4 = vcmask 1042434  }
  0x9a   : > { %v1162_v21 = vpack.c.bf16 %v1130_v19, %v1130_v19  ;;  %v674_v22 = vmul.f32 0.5, %v673_v5  ;;  %vm529_vm15 = vmor %vm527_vm13, %vm528_vm14  ;;  %vm2269_vm5 = vcmask 1043459  }
  0x9b   : > { %884 = vperm.xlu0 %2584, %v3243_v12   ;;  %v684_v19 = vmul.f32 0.5, %v683_v4  ;;  %v523_v20 = vmul.f32 %v3473_v9, %v522_v25 }
  0x9c   : > { %889 = vperm.xlu1 %2585, %v3263_v28   ;;  %v1377_v39 = vunpack.c.l.b16 %v1162_v21  ;;  %v513_v21 = vmul.f32 %v3447_v59, %v512_v10  ;;  %v675_v44 = vsub.f32 1.5, %v674_v22 }
  0x9d   : > { %v860_v31 = vpop.permute.xlu0 %859  ;;  %v685_v42 = vsub.f32 1.5, %v684_v19 }
  0x9e   : > { %v775_v47 = vpop.permute.xlu1 %774  ;;  %v1381_v12 = vpack.c.b16 %v1377_v39, %v1376_v35  ;;  %v936_v43 = vmul.f32 %v3310_v49, %v860_v31  ;;  %v676_v30 = vmul.f32 %v3406_v48, %v675_v44 }
  0x9f   : > { %804 = vperm.xlu2 %2586, %v3275_v36   ;;  %v919_v35 = vmul.f32 %v3310_v49, %v775_v47  ;;  %v686_v36 = vmul.f32 %v3413_v23, %v685_v42 }
  0xa0   : > { %1402 = vmatpush.bf16.msra.mxu2 %v1381_v12  ;;  %v514_v12 = vmul.f32 0.5, %v513_v21  ;;  %v680_v6 = vsel %vm3513_vm9, %v3406_v48, %v676_v30 }
  0xa1   : > { %v3419_v54 = vpop.permute.xlu2 %849  ;;  %v1111_v47 = vmul.f32 %v3383_v27, %v919_v35 }
  0xa2   : > { %v515_v26 = vsub.f32 1.5, %v514_v12 }
  0xa3   : > { %809 = vperm.xlu0 %2584, %v3271_v33   ;;  %v690_v33 = vsel %vm3504_vm8, %v3413_v23, %v686_v36 }
  0xa4   : > { %1079 = vperm.xlu1 %2585, %v700_v51   ;;  %v516_v55 = vmul.f32 %v3447_v59, %v515_v26 }
  0xa5   : > { %v3449_v60 = vpop.permute.xlu0 %979 }
  0xa6   : > { %4104 = vst [vmem:[#allocation7_spill] sm:$0xff] %v3449_v60  ;;  %v3451_v62 = vpop.permute.xlu1 %984  ;;  %v1113_v53 = vmul.f32 %v3449_v60, %v921_v37  ;;  %v524_v37 = vmul.f32 0.5, %v523_v20  ;;  %v520_v48 = vsel %vm3528_vm12, %v3447_v59, %v516_v55  ;;  %v934_v59 = vmul.f32 %v3310_v49, %v3419_v54 }
  0xa7   : > { %v1114_v0 = vmul.f32 %v3451_v62, %v922_v38  ;;  %1084 = vperm.xlu2 %2586, %v710_v56  }
  0xa8   : > { %v1145_v7 = vpack.c.bf16 %v1113_v53, %v1113_v53  ;;  %v525_v53 = vsub.f32 1.5, %v524_v37 }
  0xa9   : > { %v1146_v8 = vpack.c.bf16 %v1114_v0, %v1114_v0  ;;  %v3475_v11 = vpop.permute.xlu2 %1039 }
  0xaa   : > { %v1205_v17 = vunpack.c.l.b16 %v1145_v7  ;;  %v526_v23 = vmul.f32 %v3473_v9, %v525_v53 }
  0xab   : > { %v1206_v18 = vunpack.c.l.b16 %v1146_v8  ;;  %999 = vperm.xlu0 %2584, %v540_v40  }
  0xac   : > { %1004 = vperm.xlu1 %2585, %v550_v1   ;;  %v530_v50 = vsel %vm529_vm15, %v3473_v9, %v526_v23 }
  0xad   : > { %v1210_v24 = vpack.c.b16 %v1206_v18, %v1205_v17  ;;  %v3483_v29 = vpop.permute.xlu0 %1049 }
  0xae   : > { %4107 = vst [vmem:[#allocation8_spill] sm:$0xff] %v3483_v29  ;;  %v3485_v34 = vpop.permute.xlu1 %1054  ;;  %v1127_v3 = vmul.f32 %v3483_v29, %v935_v58 }
  0xaf   : > { %4108 = vst [vmem:[#allocation9_spill] sm:$0xff] %v3485_v34  ;;  %1232 = vmatpush.bf16.msra.mxu0 %v1210_v24  ;;  %v1128_v39 = vmul.f32 %v3485_v34, %v936_v43  ;;  %874 = vperm.xlu2 %2586, %v3356_v63   ;;  %v920_v63 = vmul.f32 %v3310_v49, %v3255_v15 }
  0xb0   : > { %v1159_v31 = vpack.c.bf16 %v1127_v3, %v1127_v3 }
  0xb1   : > { %v1160_v28 = vpack.c.bf16 %v1128_v39, %v1128_v39  ;;  %v3492_v51 = vpop.permute.xlu2 %964 }
  0xb2   : > { %v1374_v32 = vunpack.c.l.b16 %v1159_v31 }
  0xb3   : > { %v1375_v52 = vunpack.c.l.b16 %v1160_v28  ;;  %879 = vperm.xlu0 %2584, %v3361_v2   ;;  %v1143_v2 = vpack.c.bf16 %v1111_v47, %v1111_v47 }
  0xb4   : > { %794 = vperm.xlu1 %2585, %v3381_v16  }
  0xb5   : > { %v1380_v13 = vpack.c.b16 %v1375_v52, %v1374_v32  ;;  %v3509_v38 = vpop.permute.xlu0 %974  ;;  %v1203_v14 = vunpack.c.l.b16 %v1143_v2 }
  0xb6   : > { %4111 = vst [vmem:[#allocation10_spill] sm:$0xff] %v3509_v38  ;;  %v845_v56 = vpop.permute.xlu1 %844  ;;  %v1112_v16 = vmul.f32 %v3509_v38, %v920_v63 }
  0xb7   : > { %1403 = vmatpush.bf16.msra.mxu2 %v1380_v13  ;;  %799 = vperm.xlu2 %2586, %v3396_v45   ;;  %v933_v7 = vmul.f32 %v3310_v49, %v845_v56 }
  0xb8   : > { %v1144_v57 = vpack.c.bf16 %v1112_v16, %v1112_v16 }
  0xb9   : > { %v755_v0 = vpop.permute.xlu2 %754  ;;  %v1125_v17 = vmul.f32 %v3475_v11, %v933_v7 }
  0xba   : > { %v1204_v4 = vunpack.c.l.b16 %v1144_v57  ;;  %v915_v15 = vmul.f32 %v3310_v49, %v755_v0  ;;  %v3573_v57 = vld [vmem:[%s3564_s10 + $0x40] sm:$0xff] }
  0xbb   : > { %1069 = vperm.xlu0 %2584, %v680_v6   ;;  %v1157_v43 = vpack.c.bf16 %v1125_v17, %v1125_v17 }
  0xbc   : > { %1074 = vperm.xlu1 %2585, %v690_v33   ;;  %v1209_v45 = vpack.c.b16 %v1204_v4, %v1203_v14 }
  0xbd   : > { %v765_v40 = vpop.permute.xlu0 %764  ;;  %v1372_v44 = vunpack.c.l.b16 %v1157_v43 }
  0xbe   : > { %v770_v5 = vpop.permute.xlu1 %769  ;;  %1233 = vmatpush.bf16.msra.mxu0 %v1209_v45  ;;  %v917_v58 = vmul.f32 %v3310_v49, %v765_v40  ;;  %v3582_v40 = vld [vmem:[%s3564_s10] sm:$0xff] }
  0xbf   : > { %v918_v8 = vmul.f32 %v3310_v49, %v770_v5  ;;  %989 = vperm.xlu2 %2586, %v520_v48  }
  0xc1   : > { %v3541_v10 = vpop.permute.xlu2 %1034  ;;  %v1110_v18 = vmul.f32 %v3492_v51, %v918_v8 }
  0xc3   : > { %994 = vperm.xlu0 %2584, %v530_v50   ;;  %v1142_v24 = vpack.c.bf16 %v1110_v18, %v1110_v18 }
  0xc5   : > { %v3548_v19 = vpop.permute.xlu0 %1044  ;;  %v1202_v42 = vunpack.c.l.b16 %v1142_v24 }
  0xc6   : > { %v3550_v22 = vpop.permute.xlu1 %959  ;;  %v1126_v25 = vmul.f32 %v3548_v19, %v934_v59  ;;  %v3593_v59 = vld [vmem:[%s3564_s10 + $0x48] sm:$0xff] }
  0xc7   : > { %v1109_v9 = vmul.f32 %v3550_v22, %v917_v58  ;;  %4116 = vst [vmem:[#allocation11_spill] sm:$0xff] %v3593_v59 }
  0xc8   : > { %v1158_v35 = vpack.c.bf16 %v1126_v25, %v1126_v25 }
  0xc9   : > { %v1141_v21 = vpack.c.bf16 %v1109_v9, %v1109_v9  ;;  %v905_v3 = vpop.permute.xlu2 %904 }
  0xca   : > { %v1373_v54 = vunpack.c.l.b16 %v1158_v35  ;;  %v945_v8 = vmul.f32 %v3310_v49, %v905_v3 }
  0xcb   : > { %v1201_v39 = vunpack.c.l.b16 %v1141_v21 }
  0xcc   : > { %v1379_v28 = vpack.c.b16 %v1373_v54, %v1372_v44 }
  0xcd   : > { %v1208_v31 = vpack.c.b16 %v1202_v42, %v1201_v39  ;;  %v835_v12 = vpop.permute.xlu0 %834 }
  0xce   : > { %v840_v20 = vpop.permute.xlu1 %839  ;;  %1404 = vmatpush.bf16.msra.mxu2 %v1379_v28  ;;  %v931_v52 = vmul.f32 %v3310_v49, %v835_v12  ;;  %v3607_v28 = vld [vmem:[%s3564_s10 + $0x8] sm:$0xff] }
  0xcf   : > { %v932_v47 = vmul.f32 %v3310_v49, %v840_v20  ;;  %1234 = vmatpush.bf16.msra.mxu0 %v1208_v31 }
  0xd1   : > { %v1124_v32 = vmul.f32 %v3541_v10, %v932_v47  ;;  %v830_v63 = vpop.permute.xlu2 %829 }
  0xd2   : > { %v930_v42 = vmul.f32 %v3310_v49, %v830_v63 }
  0xd3   : > { %v1156_v41 = vpack.c.bf16 %v1124_v32, %v1124_v32 }
  0xd5   : > { %v760_v13 = vpop.permute.xlu0 %759  ;;  %v1371_v56 = vunpack.c.l.b16 %v1156_v41 }
  0xd6   : > { %v3557_v36 = vpop.permute.xlu1 %1029  ;;  %v916_v2 = vmul.f32 %v3310_v49, %v760_v13 }
  0xd7   : > { %v1123_v30 = vmul.f32 %v3557_v36, %v931_v52 }
  0xd9   : > { %v1155_v26 = vpack.c.bf16 %v1123_v30, %v1123_v30  ;;  %v3575_v55 = vpop.permute.xlu2 %1019 }
  0xdb   : > { %v1370_v37 = vunpack.c.l.b16 %v1155_v26  ;;  %v3615_v26 = vld [vmem:[%s3564_s10 + $0x50] sm:$0xff] }
  0xdc   : > { %4117 = vst [vmem:[#allocation12_spill] sm:$0xff] %v3615_v26 }
  0xdd   : > { %v1378_v16 = vpack.c.b16 %v1371_v56, %v1370_v37  ;;  %v3570_v6 = vpop.permute.xlu0 %949 }
  0xde   : > { %v3568_v33 = vpop.permute.xlu1 %954  ;;  %v1107_v53 = vmul.f32 %v3570_v6, %v915_v15 }
  0xdf   : > { %1405 = vmatpush.bf16.msra.mxu2 %v1378_v16  ;;  %v1108_v1 = vmul.f32 %v3568_v33, %v916_v2 }
  0xe0   : > { %v1139_v14 = vpack.c.bf16 %v1107_v53, %v1107_v53 }
  0xe1   : > { %v1140_v0 = vpack.c.bf16 %v1108_v1, %v1108_v1  ;;  %v900_v7 = vpop.permute.xlu2 %899 }
  0xe2   : > { %2448 = vmatmul.msk.bf16.vlgmr.msra.gmra.mxu2 %vm1215_vm0, %v3573_v57  ;;  %v1199_v4 = vunpack.c.l.b16 %v1139_v14  ;;  %v944_v16 = vmul.f32 %v3310_v49, %v900_v7 }
  0xe3   : > { %v1200_v45 = vunpack.c.l.b16 %v1140_v0  ;;  %v3630_v0 = vld [vmem:[%s3564_s10 + $0x10] sm:$0xff] }
  0xe5   : > { %v1207_v48 = vpack.c.b16 %v1200_v45, %v1199_v4  ;;  %v910_v5 = vpop.permute.xlu0 %909 }
  0xe6   : > { %v825_v23 = vpop.permute.xlu1 %824  ;;  %v946_v50 = vmul.f32 %v3310_v49, %v910_v5 }
  0xe7   : > { %1235 = vmatpush.bf16.msra.mxu0 %v1207_v48  ;;  %v929_v58 = vmul.f32 %v3310_v49, %v825_v23 }
  0xe9   : > { %v1121_v21 = vmul.f32 %v3575_v55, %v929_v58  ;;  %v3601_v35 = vpop.permute.xlu2 %1089 }
  0xea   : > { %2408 = vmatmul.msk.bf16.vlgmr.msra.gmra.mxu0 %vm1215_vm0, %v3582_v40 }
  0xeb   : > { %v1153_v20 = vpack.c.bf16 %v1121_v21, %v1121_v21 }
  0xed   : > { %v3590_v18 = vpop.permute.xlu0 %1099  ;;  %v1291_v32 = vunpack.c.l.b16 %v1153_v20 }
  0xee   : > { %v3588_v17 = vpop.permute.xlu1 %1104  ;;  %v1137_v43 = vmul.f32 %v3590_v18, %v945_v8 }
  0xef   : > { %v1138_v24 = vmul.f32 %v3588_v17, %v946_v50 }
  0xf0   : > { %v1169_v9 = vpack.c.bf16 %v1137_v43, %v1137_v43 }
  0xf1   : > { %v1170_v25 = vpack.c.bf16 %v1138_v24, %v1138_v24  ;;  %v3612_v63 = vpop.permute.xlu2 %1014 }
  0xf2   : > { %2449 = vmatmul.msk.bf16.gmra.mxu2 %vm1215_vm0, %v3593_v59  ;;  %v1461_v3 = vunpack.c.l.b16 %v1169_v9 }
  0xf3   : > { %v1462_v39 = vunpack.c.l.b16 %v1170_v25 }
  0xf5   : > { %v1466_v44 = vpack.c.b16 %v1462_v39, %v1461_v3  ;;  %v3604_v31 = vpop.permute.xlu0 %1024  ;;  %v3637_v39 = vld [vmem:[%s3564_s10 + $0x58] sm:$0xff] }
  0xf6   : > { %v895_v54 = vpop.permute.xlu1 %894  ;;  %v1122_v12 = vmul.f32 %v3604_v31, %v930_v42  ;;  %4118 = vst [vmem:[#allocation13_spill] sm:$0xff] %v3637_v39 }
  0xf7   : > { %1487 = vmatpush.bf16.msrb.mxu2 %v1466_v44  ;;  %2537 = vmatpush.bf16.msra.mxu3 %v1466_v44  ;;  %v943_v37 = vmul.f32 %v3310_v49, %v895_v54 }
  0xf8   : > { %v1154_v47 = vpack.c.bf16 %v1122_v12, %v1122_v12 }
  0xf9   : > { %v1135_v15 = vmul.f32 %v3601_v35, %v943_v37  ;;  %v805_v5 = vpop.permute.xlu2 %804 }
  0xfa   : > { %2409 = vmatmul.msk.bf16.gmra.mxu0 %vm1215_vm0, %v3607_v28  ;;  %v1292_v52 = vunpack.c.l.b16 %v1154_v47 }
  0xfb   : > { %v1167_v4 = vpack.c.bf16 %v1135_v15, %v1135_v15 }
  0xfc   : > { %v1296_v13 = vpack.c.b16 %v1292_v52, %v1291_v32  ;;  %v3649_v32 = vld [vmem:[%s3564_s10 + $0x18] sm:$0xff] }
  0xfd   : > { %v815_v30 = vpop.permute.xlu0 %814  ;;  %v1459_v43 = vunpack.c.l.b16 %v1167_v4 }
  0xfe   : > { %v820_v41 = vpop.permute.xlu1 %819  ;;  %1317 = vmatpush.bf16.msra.mxu1 %v1296_v13  ;;  %v927_v53 = vmul.f32 %v3310_v49, %v815_v30 }
  0xff   : > { %v928_v56 = vmul.f32 %v3310_v49, %v820_v41 }
 0x101   : > { %v1120_v2 = vmul.f32 %v3612_v63, %v928_v56  ;;  %v3640_v44 = vpop.permute.xlu2 %1084  ;;  %v925_v56 = vmul.f32 %v3310_v49, %v805_v5 }
 0x102   : > { %2450 = vmatmul.msk.bf16.gmra.mxu2 %vm1215_vm0, %v3615_v26 }
 0x103   : > { %v1152_v45 = vpack.c.bf16 %v1120_v2, %v1120_v2 }
 0x105   : > { %v3627_v14 = vpop.permute.xlu0 %1094  ;;  %v1290_v58 = vunpack.c.l.b16 %v1152_v45 }
 0x106   : > { %v3625_v1 = vpop.permute.xlu1 %1009  ;;  %v1136_v23 = vmul.f32 %v3627_v14, %v944_v16 }
 0x107   : > { %v1119_v48 = vmul.f32 %v3625_v1, %v927_v53 }
 0x108   : > { %v1168_v50 = vpack.c.bf16 %v1136_v23, %v1136_v23 }
 0x109   : > { %v1151_v8 = vpack.c.bf16 %v1119_v48, %v1119_v48  ;;  %v875_v15 = vpop.permute.xlu2 %874 }
 0x10a   : > { %2410 = vmatmul.msk.bf16.gmra.mxu0 %vm1215_vm0, %v3630_v0  ;;  %v1460_v24 = vunpack.c.l.b16 %v1168_v50 }
 0x10b   : > { %v1289_v7 = vunpack.c.l.b16 %v1151_v8 }
 0x10c   : > { %v1465_v25 = vpack.c.b16 %v1460_v24, %v1459_v43 }
 0x10d   : > { %v1295_v9 = vpack.c.b16 %v1290_v58, %v1289_v7  ;;  %v885_v3 = vpop.permute.xlu0 %884 }
 0x10e   : > { %v890_v21 = vpop.permute.xlu1 %889  ;;  %1488 = vmatpush.bf16.msrb.mxu2 %v1465_v25  ;;  %2538 = vmatpush.bf16.msra.mxu3 %v1465_v25  ;;  %v941_v12 = vmul.f32 %v3310_v49, %v885_v3 }
 0x10f   : > { %v942_v42 = vmul.f32 %v3310_v49, %v890_v21  ;;  %1318 = vmatpush.bf16.msra.mxu1 %v1295_v9  ;;  %v939_v9 = vmul.f32 %v3310_v49, %v875_v15 }
 0x111   : > { %v1134_v54 = vmul.f32 %v3640_v44, %v942_v42  ;;  %v800_v24 = vpop.permute.xlu2 %799 }
 0x112   : > { %2451 = vmatmul.msk.bf16.gmra.mxu2 %vm1215_vm0, %v3637_v39 }
 0x113   : > { %v1166_v52 = vpack.c.bf16 %v1134_v54, %v1134_v54 }
 0x115   : > { %v810_v47 = vpop.permute.xlu0 %809  ;;  %v1458_v37 = vunpack.c.l.b16 %v1166_v52 }
 0x116   : > { %v3646_v20 = vpop.permute.xlu1 %1079  ;;  %v926_v2 = vmul.f32 %v3310_v49, %v810_v47 }
 0x117   : > { %v1133_v13 = vmul.f32 %v3646_v20, %v941_v12 }
 0x119   : > { %v1165_v41 = vpack.c.bf16 %v1133_v13, %v1133_v13  ;;  %v3671_v13 = vpop.permute.xlu2 %989 }
 0x11a   : > { %2411 = vmatmul.msk.bf16.gmra.mxu0 %vm1215_vm0, %v3649_v32 }
 0x11b   : > { %v1457_v30 = vunpack.c.l.b16 %v1165_v41 }
 0x11d   : > { %v1464_v16 = vpack.c.b16 %v1458_v37, %v1457_v30  ;;  %v3658_v4 = vpop.permute.xlu0 %999 }
 0x11e   : > { %v3656_v53 = vpop.permute.xlu1 %1004  ;;  %v1117_v45 = vmul.f32 %v3658_v4, %v925_v56  ;;  %v924_v56 = vmul.f32 %v3310_v49, %v800_v24  ;;  %v2536_v24 = vld [vmem:[%s4042_s4 + $0x8] sm:$0xff] }
 0x11f   : > { %1489 = vmatpush.bf16.msrb.mxu2 %v1464_v16  ;;  %2539 = vmatpush.bf16.msra.mxu3 %v1464_v16  ;;  %v1118_v48 = vmul.f32 %v3656_v53, %v926_v2  ;;  %v3678_v16 = vld [vmem:[%s3564_s10 + $0x60] sm:$0xff] }
 0x120   : > { %v1149_v23 = vpack.c.bf16 %v1117_v45, %v1117_v45  ;;  %v3681_v45 = vld [vmem:[%s3564_s10 + $0x78] sm:$0xff]  ;;  %1699 = vmatpush.bf16.msrb.mxu0 %v2536_v24 }
 0x121   : > { %v1150_v8 = vpack.c.bf16 %v1118_v48, %v1118_v48  ;;  %4119 = vst [vmem:[#allocation14_spill] sm:$0xff] %v3681_v45 }
 0x122   : > { %v1287_v50 = vunpack.c.l.b16 %v1149_v23 }
 0x123   : > { %v1288_v7 = vunpack.c.l.b16 %v1150_v8 }
 0x125   : > { %v1294_v58 = vpack.c.b16 %v1288_v7, %v1287_v50  ;;  %v880_v43 = vpop.permute.xlu0 %879 }
 0x126   : > { %v795_v5 = vpop.permute.xlu1 %794  ;;  %v940_v25 = vmul.f32 %v3310_v49, %v880_v43  ;;  %v3699_v43 = vld [vmem:[%s3564_s10 + $0x28] sm:$0xff] }
 0x127   : > { %1319 = vmatpush.bf16.msra.mxu1 %v1294_v58  ;;  %v923_v42 = vmul.f32 %v3310_v49, %v795_v5  ;;  %v3689_v58 = vld [vmem:[%s3564_s10 + $0x20] sm:$0xff]  ;;  %v3694_v5 = vld [vmem:[%s3564_s10 + $0x68] sm:$0xff]  ;;  %4121 = vst [vmem:[#allocation16_spill] sm:$0xff] %v3699_v43 }
 0x128   : > { %4120 = vst [vmem:[#allocation15_spill] sm:$0xff] %v3694_v5 }
 0x129   : > { %v1115_v41 = vmul.f32 %v3671_v13, %v923_v42  ;;  %v3715_v42 = vld [vmem:[%s3564_s10 + $0x30] sm:$0xff] }
 0x12a   : > { %4123 = vst [vmem:[#allocation18_spill] sm:$0xff] %v3715_v42 }
 0x12b   : > { %v1147_v48 = vpack.c.bf16 %v1115_v41, %v1115_v41 }
 0x12d   : > { %v3666_v3 = vpop.permute.xlu0 %1069  ;;  %v1285_v49 = vunpack.c.l.b16 %v1147_v48 }
 0x12e   : > { %v3664_v21 = vpop.permute.xlu1 %1074  ;;  %v1131_v12 = vmul.f32 %v3666_v3, %v939_v9  ;;  %v2535_v9 = vld [vmem:[%s4042_s4] sm:$0xff] }
 0x12f   : > { %v1132_v54 = vmul.f32 %v3664_v21, %v940_v25  ;;  %v3710_v25 = vld [vmem:[%s3564_s10 + $0x70] sm:$0xff]  ;;  %1700 = vmatpush.bf16.msrb.mxu0 %v2535_v9 }
 0x130   : > { %v1163_v47 = vpack.c.bf16 %v1131_v12, %v1131_v12  ;;  %4122 = vst [vmem:[#allocation17_spill] sm:$0xff] %v3710_v25 }
 0x131   : > { %v1164_v52 = vpack.c.bf16 %v1132_v54, %v1132_v54 }
 0x132   : > { %v1455_v30 = vunpack.c.l.b16 %v1163_v47 }
 0x133   : > { %v1456_v37 = vunpack.c.l.b16 %v1164_v52  ;;  %v3723_v52 = vld [vmem:[%s4041_s3] ss:$0 sm:$0xff] }
 0x135   : > { %v1463_v15 = vpack.c.b16 %v1456_v37, %v1455_v30  ;;  %v3675_v2 = vpop.permute.xlu0 %994 }
 0x136   : > { %v1116_v23 = vmul.f32 %v3675_v2, %v924_v56 }
 0x137   : > { %1490 = vmatpush.bf16.msrb.mxu2 %v1463_v15  ;;  %2540 = vmatpush.bf16.msra.mxu3 %v1463_v15  ;;  %v3729_v15 = vld [vmem:[%s3564_s10 + $0x38] sm:$0xff]  ;;  %s2309_s10 = sshll.u32 %s2305_s23, 4  ;;  %s2310_s10 = int_to_ptr.hbm [resolvable:$true] %s2309_s10 }
 0x138   : > { %v1148_v8 = vpack.c.bf16 %v1116_v23, %v1116_v23  ;;  %4124 = vst [vmem:[#allocation19_spill] sm:$0xff] %v3729_v15  ;;  %s2671_s13 = sshra.s32 %s2310_s10, 4  ;;  %s2672_s13 = int_to_ptr.hbm [resolvable:$true] %s2671_s13 }
 0x139   : > { %s2673_s18 = scalar_lea.hbm %s2672_s13, 4  ;;  %p2678_p0 = scmp.lt.s32.totalorder %s2672_s13, %s4046_s8 }
 0x13a   : > { %2468 = vmatmul.msk.bf16.vlgmr.msrb.gmra.mxu2 %vm1215_vm0, %v3678_v16  ;;  %2471 = vmatmul.msk.bf16.vlgmr.msra.gmra.mxu3 %vm1215_vm0, %v3681_v45  ;;  %v1286_v50 = vunpack.c.l.b16 %v1148_v8  ;;  %p2674_p11 = scmp.ne.s32.totalorder %s2672_s13, %s2673_s18  ;;  %p2679_p1 = scmp.lt.s32.totalorder %s2677_s22, %s2673_s18 }
 0x13b   : > { %2541 = vmatpush.bf16.msrb.mxu3 %v2536_v24 }
 0x13c   : > { %v1293_v7 = vpack.c.b16 %v1286_v50, %v1285_v49  ;;  %p2675_p12 = pnand %p2674_p11, %p2803_p5  ;;  %p2680_p2 = por %p2679_p1, %p2678_p0 }
 0x13e   : > { %1320 = vmatpush.bf16.msra.mxu1 %v1293_v7  ;;  %p2676_p13 = pneg %p2675_p12 }
 0x13f   : > { %2542 = vmatpush.bf16.msrb.mxu3 %v2535_v9 }
 0x140   : > { %p2681_p3 = pnand %p2680_p2, %p2676_p13 }
 0x141   : > { %2428 = vmatmul.msk.bf16.vlgmr.msra.gmra.mxu1 %vm1215_vm0, %v3689_v58 }
 0x14a   : > { %2469 = vmatmul.msk.bf16.gmra.mxu2 %vm1215_vm0, %v3694_v5 }
 0x151   : > { %2429 = vmatmul.msk.bf16.gmra.mxu1 %vm1215_vm0, %v3699_v43 }
 0x15a   : > { %2470 = vmatmul.msk.bf16.gmra.mxu2 %vm1215_vm0, %v3710_v25 }
 0x161   : > { %2430 = vmatmul.msk.bf16.gmra.mxu1 %vm1215_vm0, %v3715_v42 }
 0x165   : > { %v1407_v54 = vpop.f32.mrf.mxu2 }
 0x166   : > { %v1528_v47 = vmul.f32 %v1407_v54, %v3557_v36 }
 0x167   : > { %v1237_v12 = vpop.f32.mrf.mxu0 }
 0x168   : > { %v1512_v41 = vmul.f32 %v1237_v12, %v3570_v6  ;;  %v1564_v37 = vadd.f32 %v3723_v52, %v1528_v47 }
 0x16a   : > { %v1548_v23 = vadd.f32 %v3723_v52, %v1512_v41  ;;  %v1596_v50 = vmax.f32 %v1564_v37, 0.0 }
 0x16c   : > { %v1580_v9 = vmax.f32 %v1548_v23, 0.0 }
 0x16d   : > { %v1409_v30 = vpop.f32.mrf.mxu2 }
 0x16e   : > { %v1529_v56 = vmul.f32 %v1409_v30, %v3541_v10 }
 0x16f   : > { %v1239_v48 = vpop.f32.mrf.mxu0 }
 0x170   : > { %v1565_v8 = vadd.f32 %v3723_v52, %v1529_v56  ;;  %v1513_v49 = vmul.f32 %v1239_v48, %v3568_v33 }
 0x171   : > { %2431 = vmatmul.msk.bf16.gmra.mxu1 %vm1215_vm0, %v3729_v15 }
 0x172   : > { %v1597_v7 = vmax.f32 %v1565_v8, 0.0  ;;  %v1549_v24 = vadd.f32 %v3723_v52, %v1513_v49 }
 0x174   : > { %v3737_v54 = vpack.c.bf16 %v1597_v7, %v1596_v50  ;;  %v1581_v12 = vmax.f32 %v1549_v24, 0.0 }
 0x175   : > { %v1412_v47 = vpop.f32.mrf.mxu2 }
 0x176   : > { %v1612_v30 = vpack.c.bf16 %v1581_v12, %v1580_v9  ;;  %v1530_v41 = vmul.f32 %v1412_v47, %v3475_v11 }
 0x177   : > { %v1242_v45 = vpop.f32.mrf.mxu0 }
 0x178   : > { %2480 = vmatmul.msk.bf16.vlgmr.msrb.gmra.mxu0 %vm1644_vm1, %v1612_v30  ;;  %v1514_v37 = vmul.f32 %v1242_v45, %v3550_v22  ;;  %v1566_v48 = vadd.f32 %v3723_v52, %v1530_v41 }
 0x17a   : > { %v1550_v23 = vadd.f32 %v3723_v52, %v1514_v37  ;;  %v1598_v24 = vmax.f32 %v1566_v48, 0.0 }
 0x17c   : > { %v1582_v30 = vmax.f32 %v1550_v23, 0.0 }
 0x17d   : > { %v1414_v56 = vpop.f32.mrf.mxu2 }
 0x17e   : > { %v1531_v8 = vmul.f32 %v1414_v56, %v3548_v19 }
 0x17f   : > { %v1244_v49 = vpop.f32.mrf.mxu0 }
 0x180   : > { %v1567_v50 = vadd.f32 %v3723_v52, %v1531_v8  ;;  %v1515_v7 = vmul.f32 %v1244_v49, %v3492_v51 }
 0x182   : > { %v1599_v9 = vmax.f32 %v1567_v50, 0.0  ;;  %v1551_v12 = vadd.f32 %v3723_v52, %v1515_v7 }
 0x184   : > { %v1621_v47 = vpack.c.bf16 %v1599_v9, %v1598_v24  ;;  %v1583_v39 = vmax.f32 %v1551_v12, 0.0 }
 0x185   : > { %v1417_v45 = vpop.f32.mrf.mxu2 }
 0x186   : > { %2489 = vmatmul.msk.bf16.vlgmr.msrb.gmra.mxu3 %vm1644_vm1, %v1621_v47  ;;  %v1613_v41 = vpack.c.bf16 %v1583_v39, %v1582_v30  ;;  %v1532_v37 = vmul.f32 %v1417_v45, %v3483_v29 }
 0x187   : > { %v1247_v15 = vpop.f32.mrf.mxu0 }
 0x188   : > { %2481 = vmatmul.msk.bf16.gmra.mxu0 %vm1644_vm1, %v1613_v41  ;;  %v1516_v56 = vmul.f32 %v1247_v15, %v3383_v27  ;;  %v1568_v48 = vadd.f32 %v3723_v52, %v1532_v37 }
 0x18a   : > { %v1552_v23 = vadd.f32 %v3723_v52, %v1516_v56  ;;  %v1600_v39 = vmax.f32 %v1568_v48, 0.0 }
 0x18c   : > { %v1584_v30 = vmax.f32 %v1552_v23, 0.0 }
 0x18d   : > { %v1419_v8 = vpop.f32.mrf.mxu2 }
 0x18e   : > { %v1533_v49 = vmul.f32 %v1419_v8, %v3485_v34 }
 0x18f   : > { %v1249_v50 = vpop.f32.mrf.mxu0 }
 0x190   : > { %v1569_v7 = vadd.f32 %v3723_v52, %v1533_v49  ;;  %v1517_v24 = vmul.f32 %v1249_v50, %v3509_v38 }
 0x192   : > { %v1601_v9 = vmax.f32 %v1569_v7, 0.0  ;;  %v1553_v12 = vadd.f32 %v3723_v52, %v1517_v24 }
 0x194   : > { %v1585_v47 = vmax.f32 %v1553_v12, 0.0  ;;  %v1622_v45 = vpack.c.bf16 %v1601_v9, %v1600_v39 }
 0x195   : > { %v1422_v15 = vpop.f32.mrf.mxu2 }
 0x196   : > { %2490 = vmatmul.msk.bf16.gmra.mxu3 %vm1644_vm1, %v1622_v45  ;;  %v1614_v41 = vpack.c.bf16 %v1585_v47, %v1584_v30  ;;  %v1534_v56 = vmul.f32 %v1422_v15, %v3290_v46 }
 0x197   : > { %v1252_v37 = vpop.f32.mrf.mxu0 }
 0x198   : > { %2482 = vmatmul.msk.bf16.gmra.mxu0 %vm1644_vm1, %v1614_v41  ;;  %v1518_v8 = vmul.f32 %v1252_v37, %v3449_v60  ;;  %v1570_v48 = vadd.f32 %v3723_v52, %v1534_v56 }
 0x19a   : > { %v1554_v23 = vadd.f32 %v3723_v52, %v1518_v8  ;;  %v1602_v9 = vmax.f32 %v1570_v48, 0.0 }
 0x19c   : > { %v1586_v47 = vmax.f32 %v1554_v23, 0.0 }
 0x19d   : > { %v1424_v49 = vpop.f32.mrf.mxu2 }
 0x19e   : > { %v1535_v50 = vmul.f32 %v1424_v49, %v3349_v61 }
 0x19f   : > { %v1254_v7 = vpop.f32.mrf.mxu0 }
 0x1a0   : > { %v1571_v24 = vadd.f32 %v3723_v52, %v1535_v50  ;;  %v1519_v39 = vmul.f32 %v1254_v7, %v3451_v62 }
 0x1a2   : > { %v1603_v12 = vmax.f32 %v1571_v24, 0.0  ;;  %v1555_v30 = vadd.f32 %v3723_v52, %v1519_v39 }
 0x1a4   : > { %v1587_v45 = vmax.f32 %v1555_v30, 0.0  ;;  %v1623_v15 = vpack.c.bf16 %v1603_v12, %v1602_v9 }
 0x1a6   : > { %2491 = vmatmul.msk.bf16.gmra.mxu3 %vm1644_vm1, %v1623_v15  ;;  %v1615_v41 = vpack.c.bf16 %v1587_v45, %v1586_v47 }
 0x1a8   : > { %2483 = vmatmul.msk.bf16.gmra.mxu0 %vm1644_vm1, %v1615_v41 }
 0x1bd   : > { %v1492_v37 = vpop.f32.mrf.mxu2 }
 0x1be   : > { %v1322_v56 = vpop.f32.mrf.mxu1  ;;  %v1536_v8 = vmul.f32 %v1492_v37, %v3666_v3 }
 0x1bf   : > { %v1520_v49 = vmul.f32 %v1322_v56, %v3671_v13 }
 0x1c0   : > { %v1572_v48 = vadd.f32 %v3723_v52, %v1536_v8 }
 0x1c1   : > { %v1556_v23 = vadd.f32 %v3723_v52, %v1520_v49 }
 0x1c2   : > { %v1604_v12 = vmax.f32 %v1572_v48, 0.0 }
 0x1c3   : > { %v1588_v45 = vmax.f32 %v1556_v23, 0.0 }
 0x1c5   : > { %v1494_v50 = vpop.f32.mrf.mxu2 }
 0x1c6   : > { %v1537_v7 = vmul.f32 %v1494_v50, %v3664_v21  ;;  %v1324_v24 = vpop.f32.mrf.mxu1 }
 0x1c7   : > { %v1521_v9 = vmul.f32 %v1324_v24, %v3675_v2 }
 0x1c8   : > { %v1573_v39 = vadd.f32 %v3723_v52, %v1537_v7 }
 0x1c9   : > { %v1557_v47 = vadd.f32 %v3723_v52, %v1521_v9 }
 0x1ca   : > { %v1605_v30 = vmax.f32 %v1573_v39, 0.0 }
 0x1cb   : > { %v1589_v15 = vmax.f32 %v1557_v47, 0.0 }
 0x1cc   : > { %v1624_v41 = vpack.c.bf16 %v1605_v30, %v1604_v12 }
 0x1cd   : > { %v1497_v37 = vpop.f32.mrf.mxu2  ;;  %v1616_v56 = vpack.c.bf16 %v1589_v15, %v1588_v45 }
 0x1ce   : > { %2492 = vmatmul.msk.bf16.gmra.mxu3 %vm1644_vm1, %v1624_v41  ;;  %v1327_v8 = vpop.f32.mrf.mxu1  ;;  %v1538_v49 = vmul.f32 %v1497_v37, %v3646_v20 }
 0x1cf   : > { %2484 = vmatmul.msk.bf16.gmra.mxu0 %vm1644_vm1, %v1616_v56  ;;  %v1522_v50 = vmul.f32 %v1327_v8, %v3658_v4 }
 0x1d0   : > { %v1574_v48 = vadd.f32 %v3723_v52, %v1538_v49 }
 0x1d1   : > { %v1558_v23 = vadd.f32 %v3723_v52, %v1522_v50 }
 0x1d2   : > { %v1606_v30 = vmax.f32 %v1574_v48, 0.0 }
 0x1d3   : > { %v1590_v15 = vmax.f32 %v1558_v23, 0.0 }
 0x1d5   : > { %v1499_v7 = vpop.f32.mrf.mxu2 }
 0x1d6   : > { %v1539_v24 = vmul.f32 %v1499_v7, %v3640_v44  ;;  %v1329_v39 = vpop.f32.mrf.mxu1  ;;  %v1507_v7 = vpop.f32.mrf.mxu3 }
 0x1d7   : > { %v1523_v12 = vmul.f32 %v1329_v39, %v3656_v53 }
 0x1d8   : > { %v1575_v9 = vadd.f32 %v3723_v52, %v1539_v24 }
 0x1d9   : > { %v1559_v45 = vadd.f32 %v3723_v52, %v1523_v12 }
 0x1da   : > { %v1607_v47 = vmax.f32 %v1575_v9, 0.0 }
 0x1db   : > { %v1591_v41 = vmax.f32 %v1559_v45, 0.0 }
 0x1dc   : > { %v1625_v37 = vpack.c.bf16 %v1607_v47, %v1606_v30 }
 0x1dd   : > { %v1502_v56 = vpop.f32.mrf.mxu2  ;;  %v1617_v8 = vpack.c.bf16 %v1591_v41, %v1590_v15 }
 0x1de   : > { %2493 = vmatmul.msk.bf16.gmra.mxu3 %vm1644_vm1, %v1625_v37  ;;  %v1332_v49 = vpop.f32.mrf.mxu1  ;;  %v1540_v50 = vmul.f32 %v1502_v56, %v3601_v35 }
 0x1df   : > { %2485 = vmatmul.msk.bf16.gmra.mxu0 %vm1644_vm1, %v1617_v8  ;;  %v1524_v24 = vmul.f32 %v1332_v49, %v3625_v1  ;;  %v1509_v49 = vpop.f32.mrf.mxu3 }
 0x1e0   : > { %v1576_v48 = vadd.f32 %v3723_v52, %v1540_v50 }
 0x1e1   : > { %v1560_v12 = vadd.f32 %v3723_v52, %v1524_v24  ;;  %v1542_v24 = vmul.f32 %v1507_v7, %v3590_v18 }
 0x1e2   : > { %v1608_v45 = vmax.f32 %v1576_v48, 0.0 }
 0x1e3   : > { %v1592_v37 = vmax.f32 %v1560_v12, 0.0  ;;  %v1578_v12 = vadd.f32 %v3723_v52, %v1542_v24 }
 0x1e5   : > { %v1504_v39 = vpop.f32.mrf.mxu2 }
 0x1e6   : > { %v1541_v9 = vmul.f32 %v1504_v39, %v3627_v14  ;;  %v1334_v23 = vpop.f32.mrf.mxu1  ;;  %v1543_v39 = vmul.f32 %v1509_v49, %v3588_v17 }
 0x1e7   : > { %v1525_v47 = vmul.f32 %v1334_v23, %v3612_v63 }
 0x1e8   : > { %v1577_v30 = vadd.f32 %v3723_v52, %v1541_v9  ;;  %v1579_v9 = vadd.f32 %v3723_v52, %v1543_v39 }
 0x1e9   : > { %v1561_v41 = vadd.f32 %v3723_v52, %v1525_v47 }
 0x1ea   : > { %v1609_v15 = vmax.f32 %v1577_v30, 0.0  ;;  %v1611_v47 = vmax.f32 %v1579_v9, 0.0 }
 0x1eb   : > { %v1593_v56 = vmax.f32 %v1561_v41, 0.0  ;;  %v1610_v41 = vmax.f32 %v1578_v12, 0.0 }
 0x1ec   : > { %v1626_v8 = vpack.c.bf16 %v1609_v15, %v1608_v45 }
 0x1ed   : > { %v1618_v50 = vpack.c.bf16 %v1593_v56, %v1592_v37  ;;  %v1627_v49 = vpack.c.bf16 %v1611_v47, %v1610_v41 }
 0x1ee   : > { %2494 = vmatmul.msk.bf16.gmra.mxu3 %vm1644_vm1, %v1626_v8  ;;  %v1337_v25 = vpop.f32.mrf.mxu1 }
 0x1ef   : > { %2486 = vmatmul.msk.bf16.gmra.mxu0 %vm1644_vm1, %v1618_v50  ;;  %v1526_v48 = vmul.f32 %v1337_v25, %v3575_v55 }
 0x1f1   : > { %v1562_v45 = vadd.f32 %v3723_v52, %v1526_v48 }
 0x1f3   : > { %v1594_v56 = vmax.f32 %v1562_v45, 0.0 }
 0x1f5   : > { %v1702_v23 = vpop.f32.mrf.mxu0 }
 0x1f6   : > { %v1339_v30 = vpop.f32.mrf.mxu1 }
 0x1f7   : > { %v1527_v15 = vmul.f32 %v1339_v30, %v3604_v31 }
 0x1f9   : > { %v1563_v37 = vadd.f32 %v3723_v52, %v1527_v15 }
 0x1fb   : > { %v1595_v8 = vmax.f32 %v1563_v37, 0.0 }
 0x1fd   : > { %v1704_v7 = vpop.f32.mrf.mxu0  ;;  %v1619_v50 = vpack.c.bf16 %v1595_v8, %v1594_v56 }
 0x1fe   : > { %2495 = vmatmul.msk.bf16.gmra.mxu3 %vm1644_vm1, %v1627_v49 }
 0x1ff   : > { %2487 = vmatmul.msk.bf16.gmra.mxu0 %vm1644_vm1, %v1619_v50 }
 0x205   : > { %v1707_v25 = vpop.f32.mrf.mxu0 }
 0x206   : > { %v1784_v59 = vmul.f32 %v1707_v25, %v3550_v22  ;;  %v1782_v25 = vmul.f32 %v1702_v23, %v3570_v6 }
 0x209   : > { %v1747_v39 = vpop.f32.mrf.mxu3 }
 0x20d   : > { %v1709_v24 = vpop.f32.mrf.mxu0 }
 0x20f   : > { %2488 = vmatmul.msk.bf16.gmra.mxu0 %vm1644_vm1, %v3737_v54  ;;  %v1785_v54 = vmul.f32 %v1709_v24, %v3492_v51 }
 0x211   : > { %v1749_v9 = vpop.f32.mrf.mxu3 }
 0x212   : > { %v1801_v24 = vmul.f32 %v1749_v9, %v3548_v19 }
 0x215   : > { %v1712_v48 = vpop.f32.mrf.mxu0 }
 0x216   : > { %v1786_v37 = vmul.f32 %v1712_v48, %v3383_v27 }
 0x218   : > { %v1818_v43 = vpack.c.bf16 %v1786_v37, %v1786_v37  ;;  %v1816_v37 = vpack.c.bf16 %v1784_v59, %v1784_v59 }
 0x219   : > { %v1752_v12 = vpop.f32.mrf.mxu3 }
 0x21d   : > { %v1714_v30 = vpop.f32.mrf.mxu0 }
 0x21e   : > { %v1787_v41 = vmul.f32 %v1714_v30, %v3509_v38 }
 0x220   : > { %v1819_v26 = vpack.c.bf16 %v1787_v41, %v1787_v41 }
 0x221   : > { %v1754_v52 = vpop.f32.mrf.mxu3 }
 0x222   : > { %v1803_v42 = vmul.f32 %v1754_v52, %v3485_v34  ;;  %v1859_v41 = vunpack.c.l.b16 %v1819_v26  ;;  %v1858_v34 = vunpack.c.l.b16 %v1818_v43  ;;  %v1814_v26 = vpack.c.bf16 %v1782_v25, %v1782_v25 }
 0x224   : > { %v1864_v9 = vpack.c.b16 %v1859_v41, %v1858_v34 }
 0x225   : > { %v1717_v45 = vpop.f32.mrf.mxu0 }
 0x226   : > { %v1788_v47 = vmul.f32 %v1717_v45, %v3449_v60  ;;  %v1802_v45 = vmul.f32 %v1752_v12, %v3483_v29  ;;  %v1800_v12 = vmul.f32 %v1747_v39, %v3475_v11  ;;  %v1854_v39 = vunpack.c.l.b16 %v1814_v26 }
 0x228   : > { %v1820_v8 = vpack.c.bf16 %v1788_v47, %v1788_v47 }
 0x229   : > { %v1757_v15 = vpop.f32.mrf.mxu3 }
 0x22a   : > { %v1804_v49 = vmul.f32 %v1757_v15, %v3290_v46  ;;  %v1860_v60 = vunpack.c.l.b16 %v1820_v8  ;;  %v1783_v15 = vmul.f32 %v1704_v7, %v3568_v33  ;;  %v1835_v46 = vpack.c.bf16 %v1803_v42, %v1803_v42 }
 0x22b   : > { %v1834_v8 = vpack.c.bf16 %v1802_v45, %v1802_v45  ;;  %v1833_v7 = vpack.c.bf16 %v1801_v24, %v1801_v24  ;;  %v1856_v42 = vunpack.c.l.b16 %v1816_v37 }
 0x22c   : > { %v1836_v48 = vpack.c.bf16 %v1804_v49, %v1804_v49 }
 0x22d   : > { %v1719_v56 = vpop.f32.mrf.mxu0  ;;  %v1963_v59 = vunpack.c.l.b16 %v1833_v7 }
 0x22e   : > { %v1789_v50 = vmul.f32 %v1719_v56, %v3451_v62  ;;  %v1817_v56 = vpack.c.bf16 %v1785_v54, %v1785_v54  ;;  %v1966_v49 = vunpack.c.l.b16 %v1836_v48  ;;  %v1965_v54 = vunpack.c.l.b16 %v1835_v46 }
 0x230   : > { %v1821_v5 = vpack.c.bf16 %v1789_v50, %v1789_v50 }
 0x231   : > { %v1759_v30 = vpop.f32.mrf.mxu3 }
 0x232   : > { %v1861_v38 = vunpack.c.l.b16 %v1821_v5  ;;  %v1805_v47 = vmul.f32 %v1759_v30, %v3349_v61  ;;  %v1815_v30 = vpack.c.bf16 %v1783_v15, %v1783_v15  ;;  %v1857_v61 = vunpack.c.l.b16 %v1817_v56 }
 0x234   : > { %v1837_v52 = vpack.c.bf16 %v1805_v47, %v1805_v47  ;;  %v1865_v50 = vpack.c.b16 %v1861_v38, %v1860_v60  ;;  %v1832_v47 = vpack.c.bf16 %v1800_v12, %v1800_v12  ;;  %v1964_v60 = vunpack.c.l.b16 %v1834_v8 }
 0x235   : > { %v1855_v38 = vunpack.c.l.b16 %v1815_v30  ;;  %v1863_v43 = vpack.c.b16 %v1857_v61, %v1856_v42 }
 0x236   : > { %v1967_v5 = vunpack.c.l.b16 %v1837_v52  ;;  %1874 = vmatpush.bf16.msrb.mxu1 %v1865_v50  ;;  %v1970_v23 = vpack.c.b16 %v1965_v54, %v1964_v60  ;;  %v1962_v45 = vunpack.c.l.b16 %v1832_v47 }
 0x237   : > { %v1862_v15 = vpack.c.b16 %v1855_v38, %v1854_v39 }
 0x238   : > { %v1971_v29 = vpack.c.b16 %v1967_v5, %v1966_v49  ;;  %v1969_v48 = vpack.c.b16 %v1963_v59, %v1962_v45 }
 0x23a   : > { %1875 = vmatpush.bf16.msrb.mxu1 %v1864_v9  ;;  %1980 = vmatpush.bf16.msra.mxu3 %v1971_v29 }
 0x23e   : > { %1876 = vmatpush.bf16.msrb.mxu1 %v1863_v43  ;;  %1981 = vmatpush.bf16.msra.mxu3 %v1970_v23 }
 0x242   : > { %1877 = vmatpush.bf16.msrb.mxu1 %v1862_v15  ;;  %1982 = vmatpush.bf16.msra.mxu3 %v1969_v48 }
 0x245   : > { %2496 = vmatmul.msk.bf16.vlgmr.msrb.gmra.mxu1 %vm1215_vm0, %v3582_v40 }
 0x24c   : > { %v1722_v46 = vpop.f32.mrf.mxu0 }
 0x251   : > { %v1762_v34 = vpop.f32.mrf.mxu3 }
 0x254   : > { %v1724_v56 = vpop.f32.mrf.mxu0 }
 0x255   : > { %2497 = vmatmul.msk.bf16.gmra.mxu1 %vm1215_vm0, %v3607_v28  ;;  %v1791_v48 = vmul.f32 %v1724_v56, %v3675_v2 }
 0x259   : > { %v1764_v29 = vpop.f32.mrf.mxu3 }
 0x25a   : > { %v1807_v56 = vmul.f32 %v1764_v29, %v3664_v21 }
 0x25c   : > { %v1727_v24 = vpop.f32.mrf.mxu0 }
 0x25d   : > { %v1792_v47 = vmul.f32 %v1727_v24, %v3658_v4  ;;  %v1790_v24 = vmul.f32 %v1722_v46, %v3671_v13  ;;  %v1806_v46 = vmul.f32 %v1762_v34, %v3666_v3 }
 0x261   : > { %v1767_v61 = vpop.f32.mrf.mxu3 }
 0x264   : > { %v1729_v41 = vpop.f32.mrf.mxu0 }
 0x265   : > { %2498 = vmatmul.msk.bf16.gmra.mxu1 %vm1215_vm0, %v3630_v0  ;;  %v1793_v9 = vmul.f32 %v1729_v41, %v3656_v53 }
 0x267   : > { %v1825_v15 = vpack.c.bf16 %v1793_v9, %v1793_v9 }
 0x269   : > { %v1769_v52 = vpop.f32.mrf.mxu3 }
 0x26a   : > { %v1809_v41 = vmul.f32 %v1769_v52, %v3640_v44 }
 0x26c   : > { %v1732_v50 = vpop.f32.mrf.mxu0  ;;  %v1841_v52 = vpack.c.bf16 %v1809_v41, %v1809_v41 }
 0x26d   : > { %v1794_v5 = vmul.f32 %v1732_v50, %v3625_v1 }
 0x26f   : > { %v1826_v60 = vpack.c.bf16 %v1794_v5, %v1794_v5 }
 0x271   : > { %v1772_v25 = vpop.f32.mrf.mxu3 }
 0x272   : > { %v1810_v38 = vmul.f32 %v1772_v25, %v3601_v35  ;;  %v1808_v25 = vmul.f32 %v1767_v61, %v3646_v20 }
 0x274   : > { %v1734_v37 = vpop.f32.mrf.mxu0  ;;  %v1842_v5 = vpack.c.bf16 %v1810_v38, %v1810_v38 }
 0x275   : > { %2499 = vmatmul.msk.bf16.gmra.mxu1 %vm1215_vm0, %v3649_v32  ;;  %v1795_v28 = vmul.f32 %v1734_v37, %v3612_v63 }
 0x276   : > { %v2017_v61 = vunpack.c.l.b16 %v1842_v5 }
 0x277   : > { %v1827_v26 = vpack.c.bf16 %v1795_v28, %v1795_v28  ;;  %v1911_v28 = vunpack.c.l.b16 %v1826_v60 }
 0x279   : > { %v1774_v40 = vpop.f32.mrf.mxu3  ;;  %v1912_v50 = vunpack.c.l.b16 %v1827_v26 }
 0x27a   : > { %v1811_v32 = vmul.f32 %v1774_v40, %v3627_v14 }
 0x27b   : > { %v1917_v9 = vpack.c.b16 %v1912_v50, %v1911_v28 }
 0x27c   : > { %v1737_v12 = vpop.f32.mrf.mxu0  ;;  %v1843_v37 = vpack.c.bf16 %v1811_v32, %v1811_v32 }
 0x27d   : > { %v1796_v49 = vmul.f32 %v1737_v12, %v3575_v55 }
 0x27e   : > { %v2018_v26 = vunpack.c.l.b16 %v1843_v37 }
 0x27f   : > { %v1828_v7 = vpack.c.bf16 %v1796_v49, %v1796_v49 }
 0x280   : > { %v2023_v29 = vpack.c.b16 %v2018_v26, %v2017_v61 }
 0x281   : > { %v1777_v8 = vpop.f32.mrf.mxu3  ;;  %v1913_v23 = vunpack.c.l.b16 %v1828_v7 }
 0x282   : > { %v1812_v0 = vmul.f32 %v1777_v8, %v3590_v18  ;;  %v1824_v8 = vpack.c.bf16 %v1792_v47, %v1792_v47 }
 0x284   : > { %v1739_v30 = vpop.f32.mrf.mxu0  ;;  %v1844_v43 = vpack.c.bf16 %v1812_v0, %v1812_v0  ;;  %v1823_v0 = vpack.c.bf16 %v1791_v48, %v1791_v48  ;;  %v1909_v47 = vunpack.c.l.b16 %v1824_v8 }
 0x285   : > { %v1797_v54 = vmul.f32 %v1739_v30, %v3604_v31 }
 0x286   : > { %v2019_v30 = vunpack.c.l.b16 %v1844_v43  ;;  %v1908_v38 = vunpack.c.l.b16 %v1823_v0  ;;  %v4127_v0 = vld [vmem:[#allocation15_spill] sm:$0xff] }
 0x287   : > { %v1829_v42 = vpack.c.bf16 %v1797_v54, %v1797_v54  ;;  %v1910_v54 = vunpack.c.l.b16 %v1825_v15  ;;  %v1838_v15 = vpack.c.bf16 %v1806_v46, %v1806_v46 }
 0x289   : > { %v1779_v59 = vpop.f32.mrf.mxu3  ;;  %v1914_v39 = vunpack.c.l.b16 %v1829_v42  ;;  %v1822_v42 = vpack.c.bf16 %v1790_v24, %v1790_v24  ;;  %v1916_v43 = vpack.c.b16 %v1910_v54, %v1909_v47  ;;  %v2013_v8 = vunpack.c.l.b16 %v1838_v15  ;;  %v4130_v54 = vld [vmem:[#allocation17_spill] sm:$0xff]  ;;  %v4131_v47 = vld [vmem:[#allocation19_spill] sm:$0xff] }
 0x28a   : > { %v1813_v45 = vmul.f32 %v1779_v59, %v3588_v17  ;;  %v1840_v59 = vpack.c.bf16 %v1808_v25, %v1808_v25 }
 0x28b   : > { %v1918_v40 = vpack.c.b16 %v1914_v39, %v1913_v23  ;;  %v1839_v23 = vpack.c.bf16 %v1807_v56, %v1807_v56  ;;  %v2016_v39 = vunpack.c.l.b16 %v1841_v52  ;;  %v4128_v56 = vld [vmem:[#allocation18_spill] sm:$0xff]  ;;  %v3874_v52 = vld [vmem:[%s4043_s5] ss:$0 sm:$0xff] }
 0x28c   : > { %v1845_v12 = vpack.c.bf16 %v1813_v45, %v1813_v45  ;;  %v1742_v49 = vpop.f32.mrf.mxu0  ;;  %v1907_v45 = vunpack.c.l.b16 %v1822_v42  ;;  %v2015_v41 = vunpack.c.l.b16 %v1840_v59 }
 0x28d   : > { %1927 = vmatpush.bf16.msra.mxu2 %v1918_v40  ;;  %v1798_v60 = vmul.f32 %v1742_v49, %v3557_v36  ;;  %v2014_v40 = vunpack.c.l.b16 %v1839_v23 }
 0x28e   : > { %v2020_v7 = vunpack.c.l.b16 %v1845_v12  ;;  %v1915_v34 = vpack.c.b16 %v1908_v38, %v1907_v45  ;;  %v2022_v12 = vpack.c.b16 %v2016_v39, %v2015_v41  ;;  %v4133_v38 = vld [vmem:[#allocation14_spill] sm:$0xff] }
 0x28f   : > { %v1830_v50 = vpack.c.bf16 %v1798_v60, %v1798_v60  ;;  %v2021_v28 = vpack.c.b16 %v2014_v40, %v2013_v8  ;;  %v4132_v60 = vld [vmem:[#allocation13_spill] sm:$0xff] }
 0x290   : > { %v2024_v32 = vpack.c.b16 %v2020_v7, %v2019_v30  ;;  %v4125_v30 = vld [vmem:[#allocation16_spill] sm:$0xff]  ;;  %v4126_v7 = vld [vmem:[#allocation11_spill] sm:$0xff] }
 0x291   : > { %1928 = vmatpush.bf16.msra.mxu2 %v1917_v9  ;;  %v1960_v25 = vunpack.c.l.b16 %v1830_v50 }
 0x292   : > { %2033 = vmatpush.bf16.msra.mxu1 %v2024_v32 }
 0x294   : > { %v1744_v48 = vpop.f32.mrf.mxu0 }
 0x295   : > { %v1799_v37 = vmul.f32 %v1744_v48, %v3541_v10  ;;  %1929 = vmatpush.bf16.msra.mxu2 %v1916_v43 }
 0x296   : > { %2034 = vmatpush.bf16.msra.mxu1 %v2023_v29 }
 0x297   : > { %v1831_v24 = vpack.c.bf16 %v1799_v37, %v1799_v37 }
 0x299   : > { %v1961_v49 = vunpack.c.l.b16 %v1831_v24  ;;  %1930 = vmatpush.bf16.msra.mxu2 %v1915_v34 }
 0x29a   : > { %2035 = vmatpush.bf16.msra.mxu1 %v2022_v12 }
 0x29b   : > { %v1968_v5 = vpack.c.b16 %v1961_v49, %v1960_v25 }
 0x29c   : > { %2500 = vmatmul.msk.bf16.vlgmr.msra.gmra.mxu2 %vm1215_vm0, %v3689_v58  ;;  %v4129_v58 = vld [vmem:[#allocation12_spill] sm:$0xff] }
 0x29d   : > { %1983 = vmatpush.bf16.msra.mxu3 %v1968_v5  ;;  %v4134_v5 = vld [vmem:[#allocation10_spill] sm:$0xff] }
 0x29e   : > { %2036 = vmatpush.bf16.msra.mxu1 %v2021_v28 }
 0x2a0   : > { %2504 = vmatmul.msk.bf16.vlgmr.msra.gmra.mxu3 %vm1215_vm0, %v3573_v57 }
 0x2a1   : > { %2508 = vmatmul.msk.bf16.vlgmr.msra.gmra.mxu1 %vm1215_vm0, %v3678_v16 }
 0x2ac   : > { %2501 = vmatmul.msk.bf16.gmra.mxu2 %vm1215_vm0, %v4125_v30 }
 0x2b0   : > { %2505 = vmatmul.msk.bf16.gmra.mxu3 %vm1215_vm0, %v4126_v7 }
 0x2b1   : > { %2509 = vmatmul.msk.bf16.gmra.mxu1 %vm1215_vm0, %v4127_v0 }
 0x2bc   : > { %2502 = vmatmul.msk.bf16.gmra.mxu2 %vm1215_vm0, %v4128_v56 }
 0x2c0   : > { %2506 = vmatmul.msk.bf16.gmra.mxu3 %vm1215_vm0, %v4129_v58 }
 0x2c1   : > { %2510 = vmatmul.msk.bf16.gmra.mxu1 %vm1215_vm0, %v4130_v54  ;;  %v4135_v54 = vld [vmem:[#allocation7_spill] sm:$0xff] }
 0x2c2   : > { %v1879_v57 = vpop.f32.mrf.mxu1 }
 0x2c3   : > { %v2058_v16 = vmul.f32 %v1879_v57, %v3570_v6 }
 0x2c5   : > { %v2094_v9 = vadd.f32 %v3874_v52, %v2058_v16 }
 0x2c7   : > { %v2126_v42 = vmax.f32 %v2094_v9, 0.0 }
 0x2c9   : > { %v2158_v61 = vsel %vm1644_vm1, %v2126_v42, 0.0 }
 0x2ca   : > { %v1881_v26 = vpop.f32.mrf.mxu1 }
 0x2cb   : > { %v2059_v32 = vmul.f32 %v1881_v26, %v3568_v33 }
 0x2cc   : > { %2503 = vmatmul.msk.bf16.gmra.mxu2 %vm1215_vm0, %v4131_v47 }
 0x2cd   : > { %v2095_v46 = vadd.f32 %v3874_v52, %v2059_v32 }
 0x2cf   : > { %v2127_v59 = vmax.f32 %v2095_v46, 0.0 }
 0x2d0   : > { %2507 = vmatmul.msk.bf16.gmra.mxu3 %vm1215_vm0, %v4132_v60 }
 0x2d1   : > { %v2159_v6 = vsel %vm1644_vm1, %v2127_v59, 0.0  ;;  %2511 = vmatmul.msk.bf16.gmra.mxu1 %vm1215_vm0, %v4133_v38 }
 0x2d2   : > { %v2160_v23 = vadd.f32 %v2159_v6, %v2158_v61  ;;  %v1884_v43 = vpop.f32.mrf.mxu1 }
 0x2d3   : > { %v2060_v33 = vmul.f32 %v1884_v43, %v3550_v22 }
 0x2d5   : > { %v2096_v39 = vadd.f32 %v3874_v52, %v2060_v33 }
 0x2d7   : > { %v2128_v29 = vmax.f32 %v2096_v39, 0.0 }
 0x2d9   : > { %v2161_v45 = vsel %vm1644_vm1, %v2128_v29, 0.0 }
 0x2da   : > { %v2162_v48 = vadd.f32 %v2161_v45, %v2160_v23  ;;  %v1886_v15 = vpop.f32.mrf.mxu1 }
 0x2db   : > { %v2061_v41 = vmul.f32 %v1886_v15, %v3492_v51 }
 0x2dd   : > { %v2097_v50 = vadd.f32 %v3874_v52, %v2061_v41 }
 0x2df   : > { %v2129_v37 = vmax.f32 %v2097_v50, 0.0 }
 0x2e1   : > { %v2163_v34 = vsel %vm1644_vm1, %v2129_v37, 0.0 }
 0x2e2   : > { %v2164_v40 = vadd.f32 %v2163_v34, %v2162_v48  ;;  %v1889_v12 = vpop.f32.mrf.mxu1 }
 0x2e3   : > { %v2062_v24 = vmul.f32 %v1889_v12, %v3383_v27 }
 0x2e5   : > { %v2098_v22 = vadd.f32 %v3874_v52, %v2062_v24 }
 0x2e7   : > { %v2130_v8 = vmax.f32 %v2098_v22, 0.0 }
 0x2e9   : > { %v2165_v25 = vsel %vm1644_vm1, %v2130_v8, 0.0 }
 0x2ea   : > { %v2166_v49 = vadd.f32 %v2165_v25, %v2164_v40  ;;  %v1891_v28 = vpop.f32.mrf.mxu1 }
 0x2eb   : > { %v2063_v30 = vmul.f32 %v1891_v28, %v4134_v5 }
 0x2ed   : > { %v2099_v51 = vadd.f32 %v3874_v52, %v2063_v30 }
 0x2ef   : > { %v2131_v7 = vmax.f32 %v2099_v51, 0.0 }
 0x2f1   : > { %v2167_v0 = vsel %vm1644_vm1, %v2131_v7, 0.0 }
 0x2f2   : > { %v2168_v56 = vadd.f32 %v2167_v0, %v2166_v49  ;;  %v1894_v58 = vpop.f32.mrf.mxu1 }
 0x2f3   : > { %v2064_v57 = vmul.f32 %v1894_v58, %v4135_v54  ;;  %v2722_v58 = vmov 64.0  }
 0x2f4   : > { %2655 = vrcp.f32 %v2722_v58 }
 0x2f5   : > { %v2100_v27 = vadd.f32 %v3874_v52, %v2064_v57 }
 0x2f7   : > { %v2132_v16 = vmax.f32 %v2100_v27, 0.0 }
 0x2f9   : > { %v2169_v9 = vsel %vm1644_vm1, %v2132_v16, 0.0 }
 0x2fa   : > { %v2170_v26 = vadd.f32 %v2169_v9, %v2168_v56  ;;  %v1896_v32 = vpop.f32.mrf.mxu1 }
 0x2fb   : > { %v2065_v43 = vmul.f32 %v1896_v32, %v3451_v62 }
 0x2fd   : > { %v2101_v29 = vadd.f32 %v3874_v52, %v2065_v43 }
 0x2ff   : > { %v2133_v48 = vmax.f32 %v2101_v29, 0.0 }
 0x301   : > { %v2171_v12 = vsel %vm1644_vm1, %v2133_v48, 0.0 }
 0x302   : > { %v3916_v25 = vadd.f32 %v2171_v12, %v2170_v26 }
 0x31e   : > { %v2038_v42 = vpop.f32.mrf.mxu1 }
 0x31f   : > { %v1932_v46 = vpop.f32.mrf.mxu2  ;;  %v2082_v15 = vmul.f32 %v2038_v42, %v3666_v3 }
 0x320   : > { %v2066_v34 = vmul.f32 %v1932_v46, %v3671_v13 }
 0x321   : > { %v2118_v62 = vadd.f32 %v3874_v52, %v2082_v15  ;;  %v4136_v15 = vld [vmem:[#allocation8_spill] sm:$0xff] }
 0x323   : > { %v1985_v47 = vpop.f32.mrf.mxu3  ;;  %v2150_v28 = vmax.f32 %v2118_v62, 0.0 }
 0x324   : > { %v2074_v24 = vmul.f32 %v1985_v47, %v3557_v36 }
 0x325   : > { %v2221_v27 = vsel %vm1644_vm1, %v2150_v28, 0.0 }
 0x326   : > { %v2040_v59 = vpop.f32.mrf.mxu1  ;;  %v2110_v5 = vadd.f32 %v3874_v52, %v2074_v24 }
 0x327   : > { %v1934_v61 = vpop.f32.mrf.mxu2  ;;  %v2083_v41 = vmul.f32 %v2040_v59, %v3664_v21  ;;  %v2102_v21 = vadd.f32 %v3874_v52, %v2066_v34  ;;  %v2256_v34 = vld [vmem:[%s4044_s6 + $0x18] sm:$0xff] }
 0x328   : > { %v2067_v50 = vmul.f32 %v1934_v61, %v3675_v2  ;;  %v2142_v16 = vmax.f32 %v2110_v5, 0.0  ;;  %2285 = vmatpush.msrb.mxu2 %v2256_v34 }
 0x329   : > { %v2119_v22 = vadd.f32 %v3874_v52, %v2083_v41  ;;  %v2134_v0 = vmax.f32 %v2102_v21, 0.0  ;;  %v4137_v21 = vld [vmem:[#allocation9_spill] sm:$0xff] }
 0x32a   : > { %v2103_v8 = vadd.f32 %v3874_v52, %v2067_v50 }
 0x32b   : > { %v1987_v6 = vpop.f32.mrf.mxu3  ;;  %v2151_v30 = vmax.f32 %v2119_v22, 0.0  ;;  %v2179_v47 = vsel %vm1644_vm1, %v2134_v0, 0.0 }
 0x32c   : > { %v2075_v3 = vmul.f32 %v1987_v6, %v3541_v10  ;;  %v2135_v36 = vmax.f32 %v2103_v8, 0.0  ;;  %v2255_v8 = vld [vmem:[%s4044_s6 + $0x10] sm:$0xff] }
 0x32d   : > { %v2222_v9 = vsel %vm1644_vm1, %v2151_v30, 0.0  ;;  %2286 = vmatpush.msrb.mxu2 %v2255_v8  ;;  %v4139_v8 = vld [vmem:[#allocation6_spill] sm:$0xff] }
 0x32e   : > { %v2043_v60 = vpop.f32.mrf.mxu1  ;;  %v2111_v51 = vadd.f32 %v3874_v52, %v2075_v3  ;;  %v2180_v32 = vsel %vm1644_vm1, %v2135_v36, 0.0 }
 0x32f   : > { %v1937_v38 = vpop.f32.mrf.mxu2  ;;  %v2084_v2 = vmul.f32 %v2043_v60, %v3646_v20  ;;  %v2173_v20 = vrot.slane %v3916_v25, 4 }
 0x330   : > { %v2068_v13 = vmul.f32 %v1937_v38, %v3658_v4  ;;  %v2143_v42 = vmax.f32 %v2111_v51, 0.0 }
 0x331   : > { %v2120_v10 = vadd.f32 %v3874_v52, %v2084_v2 }
 0x332   : > { %v2104_v4 = vadd.f32 %v3874_v52, %v2068_v13  ;;  %v2201_v29 = vsel %vm1644_vm1, %v2143_v42, 0.0 }
 0x333   : > { %v1990_v23 = vpop.f32.mrf.mxu3  ;;  %v2152_v59 = vmax.f32 %v2120_v10, 0.0 }
 0x334   : > { %v2136_v6 = vmax.f32 %v2104_v4, 0.0 }
 0x336   : > { %v2045_v33 = vpop.f32.mrf.mxu1 }
 0x337   : > { %v1939_v39 = vpop.f32.mrf.mxu2  ;;  %v2085_v56 = vmul.f32 %v2045_v33, %v3640_v44  ;;  %v2076_v44 = vmul.f32 %v1990_v23, %v3475_v11  ;;  %v2200_v33 = vsel %vm1644_vm1, %v2142_v16, 0.0  ;;  %v2223_v11 = vadd.f32 %v2222_v9, %v2221_v27 }
 0x338   : > { %v2069_v54 = vmul.f32 %v1939_v39, %v3656_v53  ;;  %v2181_v23 = vadd.f32 %v2180_v32, %v2179_v47  ;;  %v3940_v39 = vpop.eup %2655  ;;  %v2202_v28 = vadd.f32 %v2201_v29, %v2200_v33 }
 0x339   : > { %v2121_v53 = vadd.f32 %v3874_v52, %v2085_v56  ;;  %vm2247_vm2 = vweird.f32 %v3940_v39 }
 0x33a   : > { %v2105_v60 = vadd.f32 %v3874_v52, %v2069_v54 }
 0x33b   : > { %v1992_v45 = vpop.f32.mrf.mxu3 }
 0x33c   : > { %v2077_v38 = vmul.f32 %v1992_v45, %v3548_v19  ;;  %v2153_v45 = vmax.f32 %v2121_v53, 0.0  ;;  %v2137_v12 = vmax.f32 %v2105_v60, 0.0 }
 0x33e   : > { %v2048_v37 = vpop.f32.mrf.mxu1  ;;  %v2113_v62 = vadd.f32 %v3874_v52, %v2077_v38  ;;  %v2184_v58 = vsel %vm1644_vm1, %v2137_v12, 0.0 }
 0x33f   : > { %v1942_v40 = vpop.f32.mrf.mxu2  ;;  %v2086_v26 = vmul.f32 %v2048_v37, %v3601_v35 }
 0x340   : > { %v2070_v46 = vmul.f32 %v1942_v40, %v3625_v1  ;;  %v2182_v40 = vsel %vm1644_vm1, %v2136_v6, 0.0  ;;  %v2145_v4 = vmax.f32 %v2113_v62, 0.0 }
 0x341   : > { %v2122_v1 = vadd.f32 %v3874_v52, %v2086_v26  ;;  %v2183_v56 = vadd.f32 %v2182_v40, %v2181_v23  ;;  %v4138_v26 = vld [vmem:[#allocation5_spill] sm:$0xff] }
 0x342   : > { %v2106_v48 = vadd.f32 %v3874_v52, %v2070_v46 }
 0x343   : > { %v1995_v49 = vpop.f32.mrf.mxu3  ;;  %v2154_v3 = vmax.f32 %v2122_v1, 0.0  ;;  %v2185_v38 = vadd.f32 %v2184_v58, %v2183_v56 }
 0x344   : > { %v2078_v41 = vmul.f32 %v1995_v49, %v4136_v15  ;;  %v2254_v49 = vld [vmem:[%s4044_s6 + $0x8] sm:$0xff]  ;;  %v2138_v30 = vmax.f32 %v2106_v48, 0.0 }
 0x345   : > { %2287 = vmatpush.msrb.mxu2 %v2254_v49  ;;  %v2228_v27 = vsel %vm1644_vm1, %v2154_v3, 0.0 }
 0x346   : > { %v2050_v7 = vpop.f32.mrf.mxu1  ;;  %v2114_v36 = vadd.f32 %v3874_v52, %v2078_v41  ;;  %v2186_v46 = vsel %vm1644_vm1, %v2138_v30, 0.0 }
 0x347   : > { %v1944_v57 = vpop.f32.mrf.mxu2  ;;  %v2087_v61 = vmul.f32 %v2050_v7, %v3627_v14  ;;  %v2112_v14 = vadd.f32 %v3874_v52, %v2076_v44  ;;  %v2226_v7 = vsel %vm1644_vm1, %v2153_v45, 0.0  ;;  %v2187_v15 = vadd.f32 %v2186_v46, %v2185_v38 }
 0x348   : > { %v2071_v35 = vmul.f32 %v1944_v57, %v3612_v63  ;;  %v2224_v63 = vsel %vm1644_vm1, %v2152_v59, 0.0  ;;  %v2146_v47 = vmax.f32 %v2114_v36, 0.0 }
 0x349   : > { %v2123_v50 = vadd.f32 %v3874_v52, %v2087_v61  ;;  %v2144_v5 = vmax.f32 %v2112_v14, 0.0  ;;  %v2225_v51 = vadd.f32 %v2224_v63, %v2223_v11 }
 0x34a   : > { %v2107_v24 = vadd.f32 %v3874_v52, %v2071_v35  ;;  %v2205_v35 = vsel %vm1644_vm1, %v2145_v4, 0.0  ;;  %v2207_v41 = vsel %vm1644_vm1, %v2146_v47, 0.0 }
 0x34b   : > { %v1997_v43 = vpop.f32.mrf.mxu3  ;;  %v2155_v0 = vmax.f32 %v2123_v50, 0.0  ;;  %v2203_v42 = vsel %vm1644_vm1, %v2144_v5, 0.0  ;;  %v2227_v44 = vadd.f32 %v2226_v7, %v2225_v51 }
 0x34c   : > { %v2139_v54 = vmax.f32 %v2107_v24, 0.0  ;;  %v2204_v48 = vadd.f32 %v2203_v42, %v2202_v28 }
 0x34d   : > { %v2230_v53 = vsel %vm1644_vm1, %v2155_v0, 0.0 }
 0x34e   : > { %v2053_v19 = vpop.f32.mrf.mxu1  ;;  %v2188_v33 = vsel %vm1644_vm1, %v2139_v54, 0.0  ;;  %v2206_v34 = vadd.f32 %v2205_v35, %v2204_v48 }
 0x34f   : > { %v2088_v37 = vmul.f32 %v2053_v19, %v3590_v18  ;;  %v1947_v22 = vpop.f32.mrf.mxu2  ;;  %v2079_v18 = vmul.f32 %v1997_v43, %v4137_v21  ;;  %v2229_v43 = vadd.f32 %v2228_v27, %v2227_v44  ;;  %v2189_v40 = vadd.f32 %v2188_v33, %v2187_v15 }
 0x350   : > { %v2072_v13 = vmul.f32 %v1947_v22, %v3575_v55  ;;  %v2253_v55 = vld [vmem:[%s4044_s6] sm:$0xff]  ;;  %v2243_v21 = vmul.f32 64.0, %v3940_v39 }
 0x351   : > { %v2124_v2 = vadd.f32 %v3874_v52, %v2088_v37  ;;  %v2115_v16 = vadd.f32 %v3874_v52, %v2079_v18  ;;  %2288 = vmatpush.msrb.mxu2 %v2253_v55  ;;  %v2231_v19 = vadd.f32 %v2230_v53, %v2229_v43  ;;  %v2174_v37 = vadd.f32 %v2173_v20, %v3916_v25 }
 0x352   : > { %v2108_v10 = vadd.f32 %v3874_v52, %v2072_v13  ;;  %v2208_v18 = vadd.f32 %v2207_v41, %v2206_v34  ;;  %v2244_v7 = vsub.f32 1.0, %v2243_v21 }
 0x353   : > { %v2000_v57 = vpop.f32.mrf.mxu3  ;;  %v2156_v9 = vmax.f32 %v2124_v2, 0.0  ;;  %v2147_v23 = vmax.f32 %v2115_v16, 0.0  ;;  %v2175_v36 = vrot.slane %v2174_v37, 2 }
 0x354   : > { %v2080_v32 = vmul.f32 %v2000_v57, %v4138_v26  ;;  %v2140_v61 = vmax.f32 %v2108_v10, 0.0  ;;  %v2245_v27 = vmul.f32 %v3940_v39, %v2244_v7 }
 0x355   : > { %v2232_v1 = vsel %vm1644_vm1, %v2156_v9, 0.0  ;;  %v2176_v57 = vadd.f32 %v2175_v36, %v2174_v37 }
 0x356   : > { %v2055_v59 = vpop.f32.mrf.mxu1  ;;  %v2116_v6 = vadd.f32 %v3874_v52, %v2080_v32  ;;  %v2233_v12 = vadd.f32 %v2232_v1, %v2231_v19  ;;  %v2246_v44 = vadd.f32 %v3940_v39, %v2245_v27 }
 0x357   : > { %v2089_v60 = vmul.f32 %v2055_v59, %v3588_v17  ;;  %v1949_v11 = vpop.f32.mrf.mxu2  ;;  %v2190_v17 = vsel %vm1644_vm1, %v2140_v61, 0.0  ;;  %v2177_v42 = vrot.slane %v2176_v57, 1 }
 0x358   : > { %v2073_v14 = vmul.f32 %v1949_v11, %v3604_v31  ;;  %v2148_v63 = vmax.f32 %v2116_v6, 0.0  ;;  %v2209_v31 = vsel %vm1644_vm1, %v2147_v23, 0.0  ;;  %v2191_v2 = vadd.f32 %v2190_v17, %v2189_v40 }
 0x359   : > { %v2125_v29 = vadd.f32 %v3874_v52, %v2089_v60  ;;  %v2210_v28 = vadd.f32 %v2209_v31, %v2208_v18  ;;  %v2178_v6 = vadd.f32 %v2177_v42, %v2176_v57  ;;  %v2248_v60 = vsel %vm2247_vm2, %v3940_v39, %v2246_v44  ;;  %v2590_v39 = vld [vmem:[%s4045_s7] ss:$0 sm:$0xff] }
 0x35a   : > { %v2109_v50 = vadd.f32 %v3874_v52, %v2073_v14  ;;  %v2211_v49 = vsel %vm1644_vm1, %v2148_v63, 0.0 }
 0x35b   : > { %v2157_v45 = vmax.f32 %v2125_v29, 0.0  ;;  %v2002_v62 = vpop.f32.mrf.mxu3  ;;  %v2212_v0 = vadd.f32 %v2211_v49, %v2210_v28  ;;  %v2249_v11 = vmul.f32 %v2248_v60, %v2178_v6 }
 0x35c   : > { %v2141_v22 = vmax.f32 %v2109_v50, 0.0  ;;  %v2081_v3 = vmul.f32 %v2002_v62, %v4139_v8 }
 0x35d   : > { %v2234_v24 = vsel %vm1644_vm1, %v2157_v45, 0.0 }
 0x35e   : > { %v2235_v13 = vadd.f32 %v2234_v24, %v2233_v12  ;;  %v2192_v25 = vsel %vm1644_vm1, %v2141_v22, 0.0  ;;  %v2117_v20 = vadd.f32 %v3874_v52, %v2081_v3 }
 0x35f   : > { %v2193_v30 = vadd.f32 %v2192_v25, %v2191_v2 }
 0x360   : > { %v2236_v5 = vrot.slane %v2235_v13, 4  ;;  %v2149_v51 = vmax.f32 %v2117_v20, 0.0 }
 0x361   : > { %v2194_v55 = vrot.slane %v2193_v30, 4 }
 0x362   : > { %v2237_v10 = vadd.f32 %v2236_v5, %v2235_v13  ;;  %v2213_v56 = vsel %vm1644_vm1, %v2149_v51, 0.0 }
 0x363   : > { %v2195_v4 = vadd.f32 %v2194_v55, %v2193_v30  ;;  %v2214_v54 = vadd.f32 %v2213_v56, %v2212_v0 }
 0x364   : > { %v2238_v58 = vrot.slane %v2237_v10, 2 }
 0x365   : > { %v2196_v16 = vrot.slane %v2195_v4, 2  ;;  %v2215_v9 = vrot.slane %v2214_v54, 4 }
 0x366   : > { %v2239_v52 = vadd.f32 %v2238_v58, %v2237_v10 }
 0x367   : > { %v2197_v26 = vadd.f32 %v2196_v16, %v2195_v4  ;;  %v2216_v32 = vadd.f32 %v2215_v9, %v2214_v54 }
 0x368   : > { %v2240_v59 = vrot.slane %v2239_v52, 1 }
 0x369   : > { %v2198_v46 = vrot.slane %v2197_v26, 1  ;;  %v2217_v47 = vrot.slane %v2216_v32, 2 }
 0x36a   : > { %v2241_v35 = vadd.f32 %v2240_v59, %v2239_v52 }
 0x36b   : > { %v2199_v53 = vadd.f32 %v2198_v46, %v2197_v26  ;;  %v2218_v61 = vadd.f32 %v2217_v47, %v2216_v32 }
 0x36c   : > { %v2252_v1 = vmul.f32 %v2248_v60, %v2241_v35 }
 0x36d   : > { %v2219_v38 = vrot.slane %v2218_v61, 1  ;;  %v2250_v43 = vmul.f32 %v2248_v60, %v2199_v53 }
 0x36f   : > { %v2220_v33 = vadd.f32 %v2219_v38, %v2218_v61  ;;  %v2266_v29 = vsel %vm2265_vm3, %v2250_v43, %v2249_v11 }
 0x371   : > { %v2251_v23 = vmul.f32 %v2248_v60, %v2220_v33 }
 0x373   : > { %v2268_v14 = vsel %vm2267_vm4, %v2251_v23, %v2266_v29 }
 0x374   : > { %v2270_v48 = vsel %vm2269_vm5, %v2252_v1, %v2268_v14 }
 0x375   : > { %2512 = vmatmul.msk.f32.vlgmr.msrb.gmra.mxu2 %vm1644_vm1, %v2270_v48 }
 0x3f8   : > { %v2290_v15 = vpop.f32.mrf.mxu2 }
 0x3f9   : > { %v2291_v41 = vadd.f32 %v2590_v39, %v2290_v15 }
 0x3fb   : > { %2293 = vst [vmem:[%s319_s26] sm:$0xf] %v2291_v41 }
 0x3fc   : > { %2684 = shalt.err (!%p2681_p3)
}
 0x3fd   : > { %2543 = dma.vmem_to_hbm [thread:$0]  (%p2803_p5), %s2308_s9, 64, %s2310_s10, %s2295_s12  }
 0x3fe PF: > { %p2549_p4 = scmp.ge.s32.totalorder %s2719_s30, 2  ;;  %s2321_s19 = sand.u32 1, %s2707_s27  }
 0x3ff   : > { %s2322_s23 = scalar_lea.sflag [#allocation3], %s2321_s19 }
 0x400   : > { %p2546_p7 = pnand %p2549_p4, %p2807_p6 }
 0x402   : > { %p2547_p8 = pneg %p2546_p7 }
 0x404   : > { %2702 = dma.done.wait (%p2547_p8), %s2322_s23, 64  }
 0x405   : > { %2704 = vsyncadd (%p2547_p8), %s2322_s23, 4294967232  ;;  %p18_p9 = scmp.ge.s32.totalorder %s2791_s11, 4   ;;  %s4140_s27 = smov %s2711_s28 }
 0x406   : > { %s4141_s28 = smov %s2715_s29  ;;  %s4142_s29 = smov %s2801_s14 }
 0x407   : > { %s4143_s30 = smov %s2791_s11  ;;  %20 = sbr.rel (!%p18_p9) target bundleno = 3 (0x3), region = 90 }
 0x40c   :  { %2328 = vsyncpa [#allocation3], 1 }
 0x40d   :  { %2330 = vsyncpa [#allocation3 + $0x1], 1 }

</bundles_post_ra>
